<compile_context>
chip_gen: v6e
topology: v6e:2x2x1
jax: 0.10.0
libtpu: 0.0.40
codegen_flags: <defaults>
</compile_context>

<pallas_src>
import functools

import jax
import jax.numpy as jnp
from jax import lax
from jax.experimental import pallas as pl
from jax.experimental.pallas import tpu as pltpu


def _round_up(v, m):
    return ((v + m - 1) // m) * m


def _convlstm_kernel(masks_ref, x_ref, h_ref, c_prev_ref, w_ref, b_ref,
                     h_out_ref, c_out_ref, *, width, hw, hidden_pad, bt):
    # masks_ref:  (8, H*W)                resident boundary masks (non-center taps)
    # x_ref:      (Bt, c_img_pad, H*W)    input images, NCHW flattened (lanes = H*W)
    # h_ref:      (Bt, hidden_pad, H*W)   previous hidden state
    # c_prev_ref: (Bt, hidden_pad, H*W)   previous cell state
    # w_ref:      (4*hidden_pad, 9*cin_pad)  conv weights, tap-major / channel-minor
    # b_ref:      (4*hidden_pad, 1)       conv bias
    # h_out_ref / c_out_ref: (Bt, hidden_pad, H*W)
    masks = masks_ref[...]                 # hoisted once per grid step
    w = w_ref[...]
    b = b_ref[...]

    for bi in range(bt):                   # short unrolled loop over the batch block
        x = x_ref[bi]                      # (c_img_pad, HW)
        h = h_ref[bi]                      # (hidden_pad, HW)
        # Both operands are padded to multiples of 8 channels, so this VMEM-only
        # concat has its seam on an 8-sublane boundary.
        stacked = jnp.concatenate([x, h], axis=0)      # (cin_pad, HW)
        cin_pad = stacked.shape[0]

        # im2col via lane rolls: 9 shifted copies (zeroed outside the image via
        # the precomputed masks), stacked on the contraction axis -> one MXU
        # matmul with K = 9*cin_pad.
        # TODO(synk): at larger cin/HW tiles, write taps into a VMEM scratch
        # instead of jnp.concatenate to bound vreg pressure.
        taps = []
        tap_i = 0
        for dh in (-1, 0, 1):
            for dw in (-1, 0, 1):
                s = dh * width + dw        # flattened source offset
                if dh == 0 and dw == 0:
                    taps.append(stacked)
                else:
                    shifted = pltpu.roll(stacked, shift=(-s) % hw, axis=1)
                    taps.append(shifted * masks[tap_i:tap_i + 1, :])
                    tap_i += 1
        patches = jnp.concatenate(taps, axis=0)        # (9*cin_pad, HW)

        # Single MXU matmul per image: (4*hid_pad, 9*cin_pad) @ (9*cin_pad, HW).
        gates = jnp.dot(w, patches, preferred_element_type=jnp.float32)
        gates = gates + b                               # lane-broadcast bias

        # torch.chunk(4, dim=channel) order: in, remember, out, cell.
        # Each slice is hidden_pad rows -> 8-sublane aligned.
        in_gate = jax.nn.sigmoid(gates[0 * hidden_pad:1 * hidden_pad, :])
        rem_gate = jax.nn.sigmoid(gates[1 * hidden_pad:2 * hidden_pad, :])
        out_gate = jax.nn.sigmoid(gates[2 * hidden_pad:3 * hidden_pad, :])
        cell_gate = jnp.tanh(gates[3 * hidden_pad:4 * hidden_pad, :])

        cell = rem_gate * c_prev_ref[bi] + in_gate * cell_gate
        new_hidden = out_gate * jnp.tanh(cell)

        c_out_ref[bi] = cell.astype(c_out_ref.dtype)
        h_out_ref[bi] = new_hidden.astype(h_out_ref.dtype)


def conv_lstm_cell(input_nchw, prev_state, weight_oihw, bias, hidden_size,
                   batch_block=None):
    """Matches ConvLSTMCell.forward.

    input_nchw:  (B, c_img, H, W) float32.
    prev_state:  None or (prev_hidden, prev_cell), each (B, hidden, H, W) NCHW.
    weight_oihw: (4*hidden, c_img + hidden, 3, 3); bias: (4*hidden,).
    Returns (hidden, cell) in NCHW, like the PyTorch module.
    """
    B, c_img, H, W = input_nchw.shape
    hw = H * W
    if prev_state is None:
        zeros = jnp.zeros((B, hidden_size, H, W), input_nchw.dtype)
        prev_state = (zeros, zeros)
    prev_hidden, prev_cell = prev_state

    c_img_pad = _round_up(c_img, 8)
    hidden_pad = _round_up(hidden_size, 8)
    cin_pad = c_img_pad + hidden_pad

    # Batch blocking: default to exactly 2 grid steps (feeds both v7x TCs,
    # amortizes per-step overhead over B/2 images); fall back to 1 image/step.
    if batch_block is None:
        batch_block = B // 2 if (B >= 2 and B % 2 == 0) else 1
    bt = batch_block
    assert B % bt == 0, "batch must be divisible by the batch block"
    n_steps = B // bt

    # Free reshapes + small zero channel pads -- NCHW(-flat) is the kernel's
    # native layout; padding puts every sublane seam on an 8-row boundary.
    x_flat = input_nchw.reshape(B, c_img, hw).astype(jnp.float32)
    if c_img_pad > c_img:
        x_flat = jnp.pad(x_flat, ((0, 0), (0, c_img_pad - c_img), (0, 0)))
    h_flat = prev_hidden.reshape(B, hidden_size, hw).astype(jnp.float32)
    c_flat = prev_cell.reshape(B, hidden_size, hw).astype(jnp.float32)
    if hidden_pad > hidden_size:
        h_flat = jnp.pad(h_flat, ((0, 0), (0, hidden_pad - hidden_size), (0, 0)))
        c_flat = jnp.pad(c_flat, ((0, 0), (0, hidden_pad - hidden_size), (0, 0)))

    # Weights: OIHW -> (4*hidden_pad, 9*cin_pad), tap-major / channel-minor on
    # K, with zero columns for the padded image/hidden channels and zero rows
    # for the padded gate outputs (kept per-gate so gate slices stay aligned).
    w = jnp.transpose(weight_oihw.astype(jnp.float32), (0, 2, 3, 1))  # (4h,3,3,cin)
    w_x = w[..., :c_img]
    w_h = w[..., c_img:]
    if c_img_pad > c_img:
        w_x = jnp.pad(w_x, ((0, 0), (0, 0), (0, 0), (0, c_img_pad - c_img)))
    if hidden_pad > hidden_size:
        w_h = jnp.pad(w_h, ((0, 0), (0, 0), (0, 0), (0, hidden_pad - hidden_size)))
    w = jnp.concatenate([w_x, w_h], axis=-1)            # (4*hid, 3, 3, cin_pad)
    w = w.reshape(4, hidden_size, 3, 3, cin_pad)
    if hidden_pad > hidden_size:
        w = jnp.pad(w, ((0, 0), (0, hidden_pad - hidden_size), (0, 0), (0, 0), (0, 0)))
    w_mat = w.reshape(4 * hidden_pad, 9 * cin_pad)

    b2 = bias.astype(jnp.float32).reshape(4, hidden_size)
    if hidden_pad > hidden_size:
        b2 = jnp.pad(b2, ((0, 0), (0, hidden_pad - hidden_size)))
    b2d = b2.reshape(4 * hidden_pad, 1)

    # Precomputed boundary masks for the 8 non-center taps (resident in VMEM).
    pos = jnp.arange(hw, dtype=jnp.int32)
    row = pos // W
    col = pos % W
    mask_rows = []
    for dh in (-1, 0, 1):
        for dw in (-1, 0, 1):
            if dh == 0 and dw == 0:
                continue
            m = jnp.ones((hw,), dtype=bool)
            if dh == -1:
                m = m & (row >= 1)
            elif dh == 1:
                m = m & (row <= H - 2)
            if dw == -1:
                m = m & (col >= 1)
            elif dw == 1:
                m = m & (col <= W - 2)
            mask_rows.append(m.astype(jnp.float32))
    masks = jnp.stack(mask_rows, axis=0)                # (8, hw)

    kernel = functools.partial(
        _convlstm_kernel, width=W, hw=hw, hidden_pad=hidden_pad, bt=bt)

    out_shape = (
        jax.ShapeDtypeStruct((B, hidden_pad, hw), jnp.float32),
        jax.ShapeDtypeStruct((B, hidden_pad, hw), jnp.float32),
    )

    h_new, c_new = pl.pallas_call(
        kernel,
        out_shape=out_shape,
        grid_spec=pltpu.PrefetchScalarGridSpec(
            num_scalar_prefetch=0,
            grid=(n_steps,),
            in_specs=[
                pl.BlockSpec((8, hw), lambda i: (0, 0)),                 # masks
                pl.BlockSpec((bt, c_img_pad, hw), lambda i: (i, 0, 0)),  # x
                pl.BlockSpec((bt, hidden_pad, hw), lambda i: (i, 0, 0)),  # h
                pl.BlockSpec((bt, hidden_pad, hw), lambda i: (i, 0, 0)),  # c_prev
                pl.BlockSpec((4 * hidden_pad, 9 * cin_pad), lambda i: (0, 0)),
                pl.BlockSpec((4 * hidden_pad, 1), lambda i: (0, 0)),
            ],
            out_specs=[
                pl.BlockSpec((bt, hidden_pad, hw), lambda i: (i, 0, 0)),
                pl.BlockSpec((bt, hidden_pad, hw), lambda i: (i, 0, 0)),
            ],
        ),
        compiler_params=pltpu.CompilerParams(
            dimension_semantics=("parallel",)),
    )(masks, x_flat, h_flat, c_flat, w_mat, b2d)

    # (B, hid_pad, H*W) is NCHW-flat: trim padded hidden channels (no-op when
    # hidden is already a multiple of 8) and free-reshape back to 4-D.
    hidden = h_new[:, :hidden_size, :].reshape(B, hidden_size, H, W)
    cell = c_new[:, :hidden_size, :].reshape(B, hidden_size, H, W)
    return hidden, cell


def _reference_conv_lstm(input_nchw, prev_state, weight_oihw, bias, hidden_size):
    """Plain-JAX reference for verification."""
    B, _, H, W = input_nchw.shape
    if prev_state is None:
        zeros = jnp.zeros((B, hidden_size, H, W), input_nchw.dtype)
        prev_state = (zeros, zeros)
    prev_hidden, prev_cell = prev_state
    stacked = jnp.concatenate([input_nchw, prev_hidden], axis=1)
    gates = lax.conv_general_dilated(
        stacked, weight_oihw, window_strides=(1, 1), padding="SAME",
        dimension_numbers=("NCHW", "OIHW", "NCHW"))
    gates = gates + bias[None, :, None, None]
    hid = hidden_size
    in_g = jax.nn.sigmoid(gates[:, 0 * hid:1 * hid])
    rem_g = jax.nn.sigmoid(gates[:, 1 * hid:2 * hid])
    out_g = jax.nn.sigmoid(gates[:, 2 * hid:3 * hid])
    cell_g = jnp.tanh(gates[:, 3 * hid:4 * hid])
    cell = rem_g * prev_cell + in_g * cell_g
    hidden = out_g * jnp.tanh(cell)
    return hidden, cell


def _make_params(key, c_img, hidden):
    k_w, k_b = jax.random.split(key)
    fan_in = (c_img + hidden) * 3 * 3
    bound = 1.0 / (fan_in ** 0.5)
    weight = jax.random.uniform(
        k_w, (4 * hidden, c_img + hidden, 3, 3), jnp.float32, -bound, bound)
    bias = jax.random.uniform(k_b, (4 * hidden,), jnp.float32, -bound, bound)
    return weight, bias


if __name__ == "__main__":
    key = jax.random.PRNGKey(0)

    # --- Test 1: aligned channels, even batch (Bt=2, 2 parallel grid steps) ---
    B, C_IN, H, W, HIDDEN = 4, 4, 16, 16, 8
    k1, k2, k3, k4, key = jax.random.split(key, 5)
    x = jax.random.normal(k1, (B, C_IN, H, W), jnp.float32)
    prev_h = jax.random.normal(k2, (B, HIDDEN, H, W), jnp.float32)
    prev_c = jax.random.normal(k3, (B, HIDDEN, H, W), jnp.float32)
    weight, bias = _make_params(k4, C_IN, HIDDEN)

    h_out, c_out = conv_lstm_cell(x, (prev_h, prev_c), weight, bias, HIDDEN)
    h_out = jax.block_until_ready(h_out)
    c_out = jax.block_until_ready(c_out)
    h0_out, c0_out = conv_lstm_cell(x, None, weight, bias, HIDDEN)
    h0_out = jax.block_until_ready(h0_out)
    c0_out = jax.block_until_ready(c0_out)

    h_ref, c_ref = _reference_conv_lstm(x, (prev_h, prev_c), weight, bias, HIDDEN)
    h0_ref, c0_ref = _reference_conv_lstm(x, None, weight, bias, HIDDEN)
    assert h_out.shape == (B, HIDDEN, H, W) and c_out.shape == (B, HIDDEN, H, W)
    assert jnp.allclose(h_out, h_ref, atol=2e-5, rtol=2e-5)
    assert jnp.allclose(c_out, c_ref, atol=2e-5, rtol=2e-5)
    assert jnp.allclose(h0_out, h0_ref, atol=2e-5, rtol=2e-5)
    assert jnp.allclose(c0_out, c0_ref, atol=2e-5, rtol=2e-5)

    # --- Test 2: unaligned c_img/hidden (exercise zero-padding paths) ---
    B2, C2, H2, W2, HID2 = 2, 3, 16, 16, 5
    k1, k2, k3, k4, key = jax.random.split(key, 5)
    x2 = jax.random.normal(k1, (B2, C2, H2, W2), jnp.float32)
    ph2 = jax.random.normal(k2, (B2, HID2, H2, W2), jnp.float32)
    pc2 = jax.random.normal(k3, (B2, HID2, H2, W2), jnp.float32)
    w2, b2 = _make_params(k4, C2, HID2)

    h2_out, c2_out = conv_lstm_cell(x2, (ph2, pc2), w2, b2, HID2)
    h2_out = jax.block_until_ready(h2_out)
    c2_out = jax.block_until_ready(c2_out)
    h2_ref, c2_ref = _reference_conv_lstm(x2, (ph2, pc2), w2, b2, HID2)
    assert h2_out.shape == (B2, HID2, H2, W2)
    assert jnp.allclose(h2_out, h2_ref, atol=2e-5, rtol=2e-5)
    assert jnp.allclose(c2_out, c2_ref, atol=2e-5, rtol=2e-5)

    print("KERNEL_OK")
</pallas_src>

<mosaic_0001>
module attributes {stable_mosaic.version = 11 : i64} {
  func.func @_convlstm_kernel(%arg0: i32, %arg1: memref<8x256xf32, #tpu.memory_space<vmem>>, %arg2: memref<2x8x256xf32, #tpu.memory_space<vmem>>, %arg3: memref<2x8x256xf32, #tpu.memory_space<vmem>>, %arg4: memref<2x8x256xf32, #tpu.memory_space<vmem>>, %arg5: memref<32x144xf32, #tpu.memory_space<vmem>>, %arg6: memref<32x1xf32, #tpu.memory_space<vmem>>, %arg7: memref<2x8x256xf32, #tpu.memory_space<vmem>>, %arg8: memref<2x8x256xf32, #tpu.memory_space<vmem>>) attributes {dimension_semantics = [#tpu.dimension_semantics<parallel>], iteration_bounds = array<i64: 2>, scalar_prefetch = 0 : i64, scratch_operands = 0 : i64, tpu.core_type = #tpu.core_type<tc>, window_params = [{pipeline_mode = #tpu.pipeline_mode<synchronous>, transform_indices = @transform_0, window_bounds = array<i64: 8, 256>}, {transform_indices = @transform_1, window_bounds = array<i64: 2, 8, 256>}, {transform_indices = @transform_2, window_bounds = array<i64: 2, 8, 256>}, {transform_indices = @transform_3, window_bounds = array<i64: 2, 8, 256>}, {pipeline_mode = #tpu.pipeline_mode<synchronous>, transform_indices = @transform_4, window_bounds = array<i64: 32, 144>}, {pipeline_mode = #tpu.pipeline_mode<synchronous>, transform_indices = @transform_5, window_bounds = array<i64: 32, 1>}, {transform_indices = @transform_6, window_bounds = array<i64: 2, 8, 256>}, {transform_indices = @transform_7, window_bounds = array<i64: 2, 8, 256>}]} {
    %c0 = arith.constant 0 : index
    %c0_0 = arith.constant 0 : index
    %0 = vector.load %arg1[%c0, %c0_0] : memref<8x256xf32, #tpu.memory_space<vmem>>, vector<8x256xf32>
    %c0_1 = arith.constant 0 : index
    %c0_2 = arith.constant 0 : index
    %1 = vector.load %arg5[%c0_1, %c0_2] : memref<32x144xf32, #tpu.memory_space<vmem>>, vector<32x144xf32>
    %c0_3 = arith.constant 0 : index
    %c0_4 = arith.constant 0 : index
    %2 = vector.load %arg6[%c0_3, %c0_4] : memref<32x1xf32, #tpu.memory_space<vmem>>, vector<32x1xf32>
    %c0_5 = arith.constant 0 : index
    %c0_6 = arith.constant 0 : index
    %c0_7 = arith.constant 0 : index
    %3 = vector.load %arg2[%c0_5, %c0_6, %c0_7] : memref<2x8x256xf32, #tpu.memory_space<vmem>>, vector<1x8x256xf32>
    %4 = vector.shape_cast %3 : vector<1x8x256xf32> to vector<8x256xf32>
    %c0_8 = arith.constant 0 : index
    %c0_9 = arith.constant 0 : index
    %c0_10 = arith.constant 0 : index
    %5 = vector.load %arg3[%c0_8, %c0_9, %c0_10] : memref<2x8x256xf32, #tpu.memory_space<vmem>>, vector<1x8x256xf32>
    %6 = vector.shape_cast %5 : vector<1x8x256xf32> to vector<8x256xf32>
    %7 = tpu.concatenate %4, %6 in 0 : vector<8x256xf32>, vector<8x256xf32> -> vector<16x256xf32>
    %c17_i32 = arith.constant 17 : i32
    %8 = tpu.dynamic_rotate %7 by %c17_i32 dim 1 : vector<16x256xf32>, i32 -> vector<16x256xf32>
    %9 = vector.extract_strided_slice %0 {offsets = [0, 0], sizes = [1, 256], strides = [1, 1]} : vector<8x256xf32> to vector<1x256xf32>
    %10 = vector.broadcast %9 : vector<1x256xf32> to vector<16x256xf32>
    %11 = arith.mulf %8, %10 : vector<16x256xf32>
    %c16_i32 = arith.constant 16 : i32
    %12 = tpu.dynamic_rotate %7 by %c16_i32 dim 1 : vector<16x256xf32>, i32 -> vector<16x256xf32>
    %13 = vector.extract_strided_slice %0 {offsets = [1, 0], sizes = [1, 256], strides = [1, 1]} : vector<8x256xf32> to vector<1x256xf32>
    %14 = vector.broadcast %13 : vector<1x256xf32> to vector<16x256xf32>
    %15 = arith.mulf %12, %14 : vector<16x256xf32>
    %c15_i32 = arith.constant 15 : i32
    %16 = tpu.dynamic_rotate %7 by %c15_i32 dim 1 : vector<16x256xf32>, i32 -> vector<16x256xf32>
    %17 = vector.extract_strided_slice %0 {offsets = [2, 0], sizes = [1, 256], strides = [1, 1]} : vector<8x256xf32> to vector<1x256xf32>
    %18 = vector.broadcast %17 : vector<1x256xf32> to vector<16x256xf32>
    %19 = arith.mulf %16, %18 : vector<16x256xf32>
    %c1_i32 = arith.constant 1 : i32
    %20 = tpu.dynamic_rotate %7 by %c1_i32 dim 1 : vector<16x256xf32>, i32 -> vector<16x256xf32>
    %21 = vector.extract_strided_slice %0 {offsets = [3, 0], sizes = [1, 256], strides = [1, 1]} : vector<8x256xf32> to vector<1x256xf32>
    %22 = vector.broadcast %21 : vector<1x256xf32> to vector<16x256xf32>
    %23 = arith.mulf %20, %22 : vector<16x256xf32>
    %c255_i32 = arith.constant 255 : i32
    %24 = tpu.dynamic_rotate %7 by %c255_i32 dim 1 : vector<16x256xf32>, i32 -> vector<16x256xf32>
    %25 = vector.extract_strided_slice %0 {offsets = [4, 0], sizes = [1, 256], strides = [1, 1]} : vector<8x256xf32> to vector<1x256xf32>
    %26 = vector.broadcast %25 : vector<1x256xf32> to vector<16x256xf32>
    %27 = arith.mulf %24, %26 : vector<16x256xf32>
    %c241_i32 = arith.constant 241 : i32
    %28 = tpu.dynamic_rotate %7 by %c241_i32 dim 1 : vector<16x256xf32>, i32 -> vector<16x256xf32>
    %29 = vector.extract_strided_slice %0 {offsets = [5, 0], sizes = [1, 256], strides = [1, 1]} : vector<8x256xf32> to vector<1x256xf32>
    %30 = vector.broadcast %29 : vector<1x256xf32> to vector<16x256xf32>
    %31 = arith.mulf %28, %30 : vector<16x256xf32>
    %c240_i32 = arith.constant 240 : i32
    %32 = tpu.dynamic_rotate %7 by %c240_i32 dim 1 : vector<16x256xf32>, i32 -> vector<16x256xf32>
    %33 = vector.extract_strided_slice %0 {offsets = [6, 0], sizes = [1, 256], strides = [1, 1]} : vector<8x256xf32> to vector<1x256xf32>
    %34 = vector.broadcast %33 : vector<1x256xf32> to vector<16x256xf32>
    %35 = arith.mulf %32, %34 : vector<16x256xf32>
    %c239_i32 = arith.constant 239 : i32
    %36 = tpu.dynamic_rotate %7 by %c239_i32 dim 1 : vector<16x256xf32>, i32 -> vector<16x256xf32>
    %37 = vector.extract_strided_slice %0 {offsets = [7, 0], sizes = [1, 256], strides = [1, 1]} : vector<8x256xf32> to vector<1x256xf32>
    %38 = vector.broadcast %37 : vector<1x256xf32> to vector<16x256xf32>
    %39 = arith.mulf %36, %38 : vector<16x256xf32>
    %40 = tpu.concatenate %11, %15, %19, %23, %7, %27, %31, %35, %39 in 0 : vector<16x256xf32>, vector<16x256xf32>, vector<16x256xf32>, vector<16x256xf32>, vector<16x256xf32>, vector<16x256xf32>, vector<16x256xf32>, vector<16x256xf32>, vector<16x256xf32> -> vector<144x256xf32>
    %cst = arith.constant dense<0.000000e+00> : vector<32x256xf32>
    %41 = tpu.matmul %1, %40, %cst {dimension_numbers = #tpu.dot_dimension_numbers<[1], [0], [0], [1], [0, 0, 1, 1], [], []>} : vector<32x144xf32>, vector<144x256xf32>, vector<32x256xf32> -> vector<32x256xf32>
    %42 = vector.broadcast %2 : vector<32x1xf32> to vector<32x256xf32>
    %43 = arith.addf %41, %42 : vector<32x256xf32>
    %44 = vector.extract_strided_slice %43 {offsets = [0, 0], sizes = [8, 256], strides = [1, 1]} : vector<32x256xf32> to vector<8x256xf32>
    %45 = arith.negf %44 : vector<8x256xf32>
    %46 = math.exp %45 : vector<8x256xf32>
    %cst_11 = arith.constant 1.000000e+00 : f32
    %47 = vector.broadcast %cst_11 : f32 to vector<8x256xf32>
    %48 = arith.addf %47, %46 : vector<8x256xf32>
    %49 = arith.divf %47, %48 : vector<8x256xf32>
    %50 = vector.extract_strided_slice %43 {offsets = [8, 0], sizes = [8, 256], strides = [1, 1]} : vector<32x256xf32> to vector<8x256xf32>
    %51 = arith.negf %50 : vector<8x256xf32>
    %52 = math.exp %51 : vector<8x256xf32>
    %cst_12 = arith.constant 1.000000e+00 : f32
    %53 = vector.broadcast %cst_12 : f32 to vector<8x256xf32>
    %54 = arith.addf %53, %52 : vector<8x256xf32>
    %55 = arith.divf %53, %54 : vector<8x256xf32>
    %56 = vector.extract_strided_slice %43 {offsets = [16, 0], sizes = [8, 256], strides = [1, 1]} : vector<32x256xf32> to vector<8x256xf32>
    %57 = arith.negf %56 : vector<8x256xf32>
    %58 = math.exp %57 : vector<8x256xf32>
    %cst_13 = arith.constant 1.000000e+00 : f32
    %59 = vector.broadcast %cst_13 : f32 to vector<8x256xf32>
    %60 = arith.addf %59, %58 : vector<8x256xf32>
    %61 = arith.divf %59, %60 : vector<8x256xf32>
    %62 = vector.extract_strided_slice %43 {offsets = [24, 0], sizes = [8, 256], strides = [1, 1]} : vector<32x256xf32> to vector<8x256xf32>
    %63 = math.tanh %62 : vector<8x256xf32>
    %c0_14 = arith.constant 0 : index
    %c0_15 = arith.constant 0 : index
    %c0_16 = arith.constant 0 : index
    %64 = vector.load %arg4[%c0_14, %c0_15, %c0_16] : memref<2x8x256xf32, #tpu.memory_space<vmem>>, vector<1x8x256xf32>
    %65 = vector.shape_cast %64 : vector<1x8x256xf32> to vector<8x256xf32>
    %66 = arith.mulf %55, %65 : vector<8x256xf32>
    %67 = arith.mulf %49, %63 : vector<8x256xf32>
    %68 = arith.addf %66, %67 : vector<8x256xf32>
    %69 = math.tanh %68 : vector<8x256xf32>
    %70 = arith.mulf %61, %69 : vector<8x256xf32>
    %c0_17 = arith.constant 0 : index
    %c0_18 = arith.constant 0 : index
    %c0_19 = arith.constant 0 : index
    %71 = vector.load %arg8[%c0_17, %c0_18, %c0_19] : memref<2x8x256xf32, #tpu.memory_space<vmem>>, vector<1x8x256xf32>
    %72 = vector.shape_cast %71 : vector<1x8x256xf32> to vector<8x256xf32>
    %73 = vector.shape_cast %68 : vector<8x256xf32> to vector<1x8x256xf32>
    tpu.vector_store %arg8[%c0_17, %c0_18, %c0_19], %73 {strides = array<i32>} : memref<2x8x256xf32, #tpu.memory_space<vmem>>, vector<1x8x256xf32>,
    %c0_20 = arith.constant 0 : index
    %c0_21 = arith.constant 0 : index
    %c0_22 = arith.constant 0 : index
    %74 = vector.load %arg7[%c0_20, %c0_21, %c0_22] : memref<2x8x256xf32, #tpu.memory_space<vmem>>, vector<1x8x256xf32>
    %75 = vector.shape_cast %74 : vector<1x8x256xf32> to vector<8x256xf32>
    %76 = vector.shape_cast %70 : vector<8x256xf32> to vector<1x8x256xf32>
    tpu.vector_store %arg7[%c0_20, %c0_21, %c0_22], %76 {strides = array<i32>} : memref<2x8x256xf32, #tpu.memory_space<vmem>>, vector<1x8x256xf32>,
    %c1 = arith.constant 1 : index
    %c0_23 = arith.constant 0 : index
    %c0_24 = arith.constant 0 : index
    %77 = vector.load %arg2[%c1, %c0_23, %c0_24] : memref<2x8x256xf32, #tpu.memory_space<vmem>>, vector<1x8x256xf32>
    %78 = vector.shape_cast %77 : vector<1x8x256xf32> to vector<8x256xf32>
    %c1_25 = arith.constant 1 : index
    %c0_26 = arith.constant 0 : index
    %c0_27 = arith.constant 0 : index
    %79 = vector.load %arg3[%c1_25, %c0_26, %c0_27] : memref<2x8x256xf32, #tpu.memory_space<vmem>>, vector<1x8x256xf32>
    %80 = vector.shape_cast %79 : vector<1x8x256xf32> to vector<8x256xf32>
    %81 = tpu.concatenate %78, %80 in 0 : vector<8x256xf32>, vector<8x256xf32> -> vector<16x256xf32>
    %c17_i32_28 = arith.constant 17 : i32
    %82 = tpu.dynamic_rotate %81 by %c17_i32_28 dim 1 : vector<16x256xf32>, i32 -> vector<16x256xf32>
    %83 = vector.extract_strided_slice %0 {offsets = [0, 0], sizes = [1, 256], strides = [1, 1]} : vector<8x256xf32> to vector<1x256xf32>
    %84 = vector.broadcast %83 : vector<1x256xf32> to vector<16x256xf32>
    %85 = arith.mulf %82, %84 : vector<16x256xf32>
    %c16_i32_29 = arith.constant 16 : i32
    %86 = tpu.dynamic_rotate %81 by %c16_i32_29 dim 1 : vector<16x256xf32>, i32 -> vector<16x256xf32>
    %87 = vector.extract_strided_slice %0 {offsets = [1, 0], sizes = [1, 256], strides = [1, 1]} : vector<8x256xf32> to vector<1x256xf32>
    %88 = vector.broadcast %87 : vector<1x256xf32> to vector<16x256xf32>
    %89 = arith.mulf %86, %88 : vector<16x256xf32>
    %c15_i32_30 = arith.constant 15 : i32
    %90 = tpu.dynamic_rotate %81 by %c15_i32_30 dim 1 : vector<16x256xf32>, i32 -> vector<16x256xf32>
    %91 = vector.extract_strided_slice %0 {offsets = [2, 0], sizes = [1, 256], strides = [1, 1]} : vector<8x256xf32> to vector<1x256xf32>
    %92 = vector.broadcast %91 : vector<1x256xf32> to vector<16x256xf32>
    %93 = arith.mulf %90, %92 : vector<16x256xf32>
    %c1_i32_31 = arith.constant 1 : i32
    %94 = tpu.dynamic_rotate %81 by %c1_i32_31 dim 1 : vector<16x256xf32>, i32 -> vector<16x256xf32>
    %95 = vector.extract_strided_slice %0 {offsets = [3, 0], sizes = [1, 256], strides = [1, 1]} : vector<8x256xf32> to vector<1x256xf32>
    %96 = vector.broadcast %95 : vector<1x256xf32> to vector<16x256xf32>
    %97 = arith.mulf %94, %96 : vector<16x256xf32>
    %c255_i32_32 = arith.constant 255 : i32
    %98 = tpu.dynamic_rotate %81 by %c255_i32_32 dim 1 : vector<16x256xf32>, i32 -> vector<16x256xf32>
    %99 = vector.extract_strided_slice %0 {offsets = [4, 0], sizes = [1, 256], strides = [1, 1]} : vector<8x256xf32> to vector<1x256xf32>
    %100 = vector.broadcast %99 : vector<1x256xf32> to vector<16x256xf32>
    %101 = arith.mulf %98, %100 : vector<16x256xf32>
    %c241_i32_33 = arith.constant 241 : i32
    %102 = tpu.dynamic_rotate %81 by %c241_i32_33 dim 1 : vector<16x256xf32>, i32 -> vector<16x256xf32>
    %103 = vector.extract_strided_slice %0 {offsets = [5, 0], sizes = [1, 256], strides = [1, 1]} : vector<8x256xf32> to vector<1x256xf32>
    %104 = vector.broadcast %103 : vector<1x256xf32> to vector<16x256xf32>
    %105 = arith.mulf %102, %104 : vector<16x256xf32>
    %c240_i32_34 = arith.constant 240 : i32
    %106 = tpu.dynamic_rotate %81 by %c240_i32_34 dim 1 : vector<16x256xf32>, i32 -> vector<16x256xf32>
    %107 = vector.extract_strided_slice %0 {offsets = [6, 0], sizes = [1, 256], strides = [1, 1]} : vector<8x256xf32> to vector<1x256xf32>
    %108 = vector.broadcast %107 : vector<1x256xf32> to vector<16x256xf32>
    %109 = arith.mulf %106, %108 : vector<16x256xf32>
    %c239_i32_35 = arith.constant 239 : i32
    %110 = tpu.dynamic_rotate %81 by %c239_i32_35 dim 1 : vector<16x256xf32>, i32 -> vector<16x256xf32>
    %111 = vector.extract_strided_slice %0 {offsets = [7, 0], sizes = [1, 256], strides = [1, 1]} : vector<8x256xf32> to vector<1x256xf32>
    %112 = vector.broadcast %111 : vector<1x256xf32> to vector<16x256xf32>
    %113 = arith.mulf %110, %112 : vector<16x256xf32>
    %114 = tpu.concatenate %85, %89, %93, %97, %81, %101, %105, %109, %113 in 0 : vector<16x256xf32>, vector<16x256xf32>, vector<16x256xf32>, vector<16x256xf32>, vector<16x256xf32>, vector<16x256xf32>, vector<16x256xf32>, vector<16x256xf32>, vector<16x256xf32> -> vector<144x256xf32>
    %cst_36 = arith.constant dense<0.000000e+00> : vector<32x256xf32>
    %115 = tpu.matmul %1, %114, %cst_36 {dimension_numbers = #tpu.dot_dimension_numbers<[1], [0], [0], [1], [0, 0, 1, 1], [], []>} : vector<32x144xf32>, vector<144x256xf32>, vector<32x256xf32> -> vector<32x256xf32>
    %116 = vector.broadcast %2 : vector<32x1xf32> to vector<32x256xf32>
    %117 = arith.addf %115, %116 : vector<32x256xf32>
    %118 = vector.extract_strided_slice %117 {offsets = [0, 0], sizes = [8, 256], strides = [1, 1]} : vector<32x256xf32> to vector<8x256xf32>
    %119 = arith.negf %118 : vector<8x256xf32>
    %120 = math.exp %119 : vector<8x256xf32>
    %cst_37 = arith.constant 1.000000e+00 : f32
    %121 = vector.broadcast %cst_37 : f32 to vector<8x256xf32>
    %122 = arith.addf %121, %120 : vector<8x256xf32>
    %123 = arith.divf %121, %122 : vector<8x256xf32>
    %124 = vector.extract_strided_slice %117 {offsets = [8, 0], sizes = [8, 256], strides = [1, 1]} : vector<32x256xf32> to vector<8x256xf32>
    %125 = arith.negf %124 : vector<8x256xf32>
    %126 = math.exp %125 : vector<8x256xf32>
    %cst_38 = arith.constant 1.000000e+00 : f32
    %127 = vector.broadcast %cst_38 : f32 to vector<8x256xf32>
    %128 = arith.addf %127, %126 : vector<8x256xf32>
    %129 = arith.divf %127, %128 : vector<8x256xf32>
    %130 = vector.extract_strided_slice %117 {offsets = [16, 0], sizes = [8, 256], strides = [1, 1]} : vector<32x256xf32> to vector<8x256xf32>
    %131 = arith.negf %130 : vector<8x256xf32>
    %132 = math.exp %131 : vector<8x256xf32>
    %cst_39 = arith.constant 1.000000e+00 : f32
    %133 = vector.broadcast %cst_39 : f32 to vector<8x256xf32>
    %134 = arith.addf %133, %132 : vector<8x256xf32>
    %135 = arith.divf %133, %134 : vector<8x256xf32>
    %136 = vector.extract_strided_slice %117 {offsets = [24, 0], sizes = [8, 256], strides = [1, 1]} : vector<32x256xf32> to vector<8x256xf32>
    %137 = math.tanh %136 : vector<8x256xf32>
    %c1_40 = arith.constant 1 : index
    %c0_41 = arith.constant 0 : index
    %c0_42 = arith.constant 0 : index
    %138 = vector.load %arg4[%c1_40, %c0_41, %c0_42] : memref<2x8x256xf32, #tpu.memory_space<vmem>>, vector<1x8x256xf32>
    %139 = vector.shape_cast %138 : vector<1x8x256xf32> to vector<8x256xf32>
    %140 = arith.mulf %129, %139 : vector<8x256xf32>
    %141 = arith.mulf %123, %137 : vector<8x256xf32>
    %142 = arith.addf %140, %141 : vector<8x256xf32>
    %143 = math.tanh %142 : vector<8x256xf32>
    %144 = arith.mulf %135, %143 : vector<8x256xf32>
    %c1_43 = arith.constant 1 : index
    %c0_44 = arith.constant 0 : index
    %c0_45 = arith.constant 0 : index
    %145 = vector.load %arg8[%c1_43, %c0_44, %c0_45] : memref<2x8x256xf32, #tpu.memory_space<vmem>>, vector<1x8x256xf32>
    %146 = vector.shape_cast %145 : vector<1x8x256xf32> to vector<8x256xf32>
    %147 = vector.shape_cast %142 : vector<8x256xf32> to vector<1x8x256xf32>
    tpu.vector_store %arg8[%c1_43, %c0_44, %c0_45], %147 {strides = array<i32>} : memref<2x8x256xf32, #tpu.memory_space<vmem>>, vector<1x8x256xf32>,
    %c1_46 = arith.constant 1 : index
    %c0_47 = arith.constant 0 : index
    %c0_48 = arith.constant 0 : index
    %148 = vector.load %arg7[%c1_46, %c0_47, %c0_48] : memref<2x8x256xf32, #tpu.memory_space<vmem>>, vector<1x8x256xf32>
    %149 = vector.shape_cast %148 : vector<1x8x256xf32> to vector<8x256xf32>
    %150 = vector.shape_cast %144 : vector<8x256xf32> to vector<1x8x256xf32>
    tpu.vector_store %arg7[%c1_46, %c0_47, %c0_48], %150 {strides = array<i32>} : memref<2x8x256xf32, #tpu.memory_space<vmem>>, vector<1x8x256xf32>,
    return
  }
  func.func @transform_0(%arg0: i32) -> (i32, i32) {
    %c0_i32 = arith.constant 0 : i32
    %c0_i32_0 = arith.constant 0 : i32
    %c0_i32_1 = arith.constant 0 : i32
    return %c0_i32, %c0_i32_0 : i32, i32
  }
  func.func @transform_1(%arg0: i32) -> (i32, i32, i32) {
    %c0_i32 = arith.constant 0 : i32
    %c0_i32_0 = arith.constant 0 : i32
    %c0_i32_1 = arith.constant 0 : i32
    return %arg0, %c0_i32, %c0_i32_0 : i32, i32, i32
  }
  func.func @transform_2(%arg0: i32) -> (i32, i32, i32) {
    %c0_i32 = arith.constant 0 : i32
    %c0_i32_0 = arith.constant 0 : i32
    %c0_i32_1 = arith.constant 0 : i32
    return %arg0, %c0_i32, %c0_i32_0 : i32, i32, i32
  }
  func.func @transform_3(%arg0: i32) -> (i32, i32, i32) {
    %c0_i32 = arith.constant 0 : i32
    %c0_i32_0 = arith.constant 0 : i32
    %c0_i32_1 = arith.constant 0 : i32
    return %arg0, %c0_i32, %c0_i32_0 : i32, i32, i32
  }
  func.func @transform_4(%arg0: i32) -> (i32, i32) {
    %c0_i32 = arith.constant 0 : i32
    %c0_i32_0 = arith.constant 0 : i32
    %c0_i32_1 = arith.constant 0 : i32
    return %c0_i32, %c0_i32_0 : i32, i32
  }
  func.func @transform_5(%arg0: i32) -> (i32, i32) {
    %c0_i32 = arith.constant 0 : i32
    %c0_i32_0 = arith.constant 0 : i32
    %c0_i32_1 = arith.constant 0 : i32
    return %c0_i32, %c0_i32_0 : i32, i32
  }
  func.func @transform_6(%arg0: i32) -> (i32, i32, i32) {
    %c0_i32 = arith.constant 0 : i32
    %c0_i32_0 = arith.constant 0 : i32
    %c0_i32_1 = arith.constant 0 : i32
    return %arg0, %c0_i32, %c0_i32_0 : i32, i32, i32
  }
  func.func @transform_7(%arg0: i32) -> (i32, i32, i32) {
    %c0_i32 = arith.constant 0 : i32
    %c0_i32_0 = arith.constant 0 : i32
    %c0_i32_1 = arith.constant 0 : i32
    return %arg0, %c0_i32, %c0_i32_0 : i32, i32, i32
  }
}

</mosaic_0001>

<bundles_post_ra>
// kernel: tpu_custom_call.1
= control target key start
LH: loop header
LB: loop body
LE: loop exit
PB: predicated region body
PF: predicated region fallthrough
CT: control target
= control target key end

     0   :  { %s2400_s0 = inlined_call_operand.vmem [shape: f32[8,256], index: 0, kind: input, shape index: {}]   ;;  %s2401_s1 = inlined_call_operand.hbm [shape: f32[4,8,256], index: 1, kind: input, shape index: {}]   ;;  %s2402_s2 = inlined_call_operand.hbm [shape: f32[4,8,256], index: 2, kind: input, shape index: {}]   ;;  %s2403_s3 = inlined_call_operand.hbm [shape: f32[4,8,256], index: 3, kind: input, shape index: {}]   ;;  %s2404_s4 = inlined_call_operand.hbm [shape: f32[32,144], index: 4, kind: input, shape index: {}]   ;;  %s2405_s5 = inlined_call_operand.vmem [shape: f32[32,1], index: 5, kind: input, shape index: {}]   ;;  %s2406_s6 = inlined_call_operand.hbm [shape: f32[4,8,256], index: 6, kind: output, shape index: {0}]   ;;  %s2407_s7 = inlined_call_operand.hbm [shape: f32[4,8,256], index: 7, kind: output, shape index: {1}]  }
   0x1   :  { %2424 = sst [smem:[#allocation23_spill]] %s2402_s2 }
   0x2   :  { %13 = vsyncpa [#allocation3], 0 }
   0x3   :  { %15 = vsyncpa [#allocation3 + $0x1], 0 }
   0x4   :  { %16 = vsyncpa [#allocation6], 0 }
   0x5   :  { %18 = vsyncpa [#allocation6 + $0x1], 0 }
   0x6   :  { %19 = vsyncpa [#allocation9], 0 }
   0x7   :  { %20 = vsyncpa [#allocation4], 0 }
   0x8   :  { %22 = vsyncpa [#allocation4 + $0x1], 0 }
   0x9   :  { %23 = vsyncpa [#allocation12], 0 }
   0xa   :  { %25 = vsyncpa [#allocation12 + $0x1], 0  ;;  %s1774_s24 = smov 0   ;;  %s1776_s25 = smov 0  }
   0xb   :  { %s1778_s26 = smov 0   ;;  %s1780_s27 = smov 0  }
   0xc LB: > { %2425 = sst [smem:[#allocation18_spill]] %s1710_s26  ;;  %s1795_s28 = sadd.s32 1, %s1714_s27   ;;  %s1714_s27 = sphi %s1780_s27, %s2452_s27   ;;  %s1710_s26 = sphi %s1778_s26, %s2454_s26   ;;  %s1706_s25 = sphi %s1776_s25, %s2456_s25   ;;  %s1702_s24 = sphi %s1774_s24, %s2455_s24  }
   0xd   : > { %2426 = sst [smem:[#allocation19_spill]] %s1714_s27  ;;  %s59_s29 = sadd.s32 1, %s1710_s26 }
   0xe   : > { %2427 = sst [smem:[#allocation20_spill]] %s1795_s28  ;;  %s56_s30 = ssub.s32 %s1714_s27, %s1795_s28 }
   0xf   : > { %p2408_p0 = scmp.ne.s32.totalorder %s1710_s26, %s1706_s25  ;;  %p57_p1 = scmp.eq.s32.totalorder %s56_s30, 0 }
  0x10   : > { %p67_p2 = scmp.eq.s32.totalorder %s1714_s27, 0  ;;  %p1388_p5 = scmp.lt.s32.totalorder %s1714_s27, 2 }
  0x11   : > { %s1804_s8 = scalar_select %p57_p1, %s1710_s26, %s59_s29  }
  0x12   : > { %p68_p3 = por %p67_p2, %p2408_p0  ;;  %s2413_s9 = sand.u32 1, %s1710_s26  }
  0x13   : > { %2428 = sst [smem:[#allocation21_spill]] %s1804_s8  ;;  %s1814_s10 = sshll.u32 %s2413_s9, 5 }
  0x14   : > { %s1817_s11 = sshll.u32 %s1714_s27, 9  ;;  %p1819_p6 = pnand %p1388_p5, %p68_p3 }
  0x15   : > { %s283_s13 = sand.u32 1, %s1714_s27   ;;  %s2430_s2 = sld [smem:[#allocation23_spill]] }
  0x16   : > { %s287_s17 = scalar_lea.vmem [#allocation5], %s1814_s10  ;;  %s1833_s19 = scalar_lea.sflag [#allocation6], %s283_s13 }
  0x17   : > { %s295_s18 = sshll.u32 %s287_s17, 4  ;;  %p1839_p8 = pneg %p1819_p6  ;;  %s1831_s18 = int_to_ptr.vmem [resolvable:$true] %s295_s18 }
  0x1b   : > { %s1828_s16 = scalar_lea.hbm %s2430_s2, %s1817_s11  ;;  %s1507_s29 = scalar_lea.hbm %s2430_s2, 1024 }
  0x1c   : > { %s1502_s20 = scalar_lea.hbm %s1828_s16, 512  ;;  %p1508_p11 = scmp.lt.s32.totalorder %s1828_s16, %s2430_s2 }
  0x1d   : > { %p1503_p7 = scmp.ne.s32.totalorder %s1828_s16, %s1502_s20  ;;  %p1509_p12 = scmp.lt.s32.totalorder %s1507_s29, %s1502_s20 }
  0x1f   : > { %p1505_p9 = pnand %p1839_p8, %p1503_p7  ;;  %p1510_p13 = por %p1509_p12, %p1508_p11 }
  0x21   : > { %p1506_p10 = pneg %p1505_p9 }
  0x23   : > { %p1511_p1 = pnand %p1510_p13, %p1506_p10 }
  0x25   : > { %1514 = shalt.err (!%p1511_p1)
}
  0x26   : > { %s1515_s13 = scalar_lea.vmem %s1831_s18, 512  ;;  %s1716_s15 = smov [#allocation5]  }
  0x27   : > { %p1516_p2 = scmp.ne.s32.totalorder %s1831_s18, %s1515_s13  ;;  %s1520_s17 = sshll.u32 %s1716_s15, 4  ;;  %s1521_s17 = int_to_ptr.vmem [resolvable:$false] %s1520_s17 }
  0x28   : > { %s1522_s22 = scalar_lea.vmem %s1521_s17, 1024  ;;  %p1523_p7 = scmp.lt.s32.totalorder %s1831_s18, %s1521_s17 }
  0x29   : > { %p1518_p3 = pnand %p1516_p2, %p1839_p8  ;;  %p1524_p9 = scmp.lt.s32.totalorder %s1522_s22, %s1515_s13 }
  0x2b   : > { %p1519_p5 = pneg %p1518_p3  ;;  %p1525_p4 = por %p1524_p9, %p1523_p7 }
  0x2d   : > { %p1526_p0 = pnand %p1525_p4, %p1519_p5 }
  0x2f   : > { %1529 = shalt.err (!%p1526_p0)
}
  0x30   : > { %s2409_s20 = smov 256   ;;  %s2411_s23 = smov 16  }
  0x31   : > { %1376 = dma.hbm_to_vmem [thread:$0]  (!%p1819_p6), %s1828_s16, 512, %s1831_s18, %s1833_s19, %s2409_s20, %s2409_s20, %s2411_s23  }
  0x32   : > { %s1866_s29 = sadd.s32 4294967295, %s1714_s27   ;;  %s1279_s30 = sadd.s32 4294967294, %s1714_s27  }
  0x33   : > { %p72_p0 = scmp.ne.s32.totalorder %s1706_s25, %s1702_s24  ;;  %p2418_p4 = scmp.eq.s32.totalorder %s1866_s29, 0 }
  0x34   : > { %p190_p10 = scmp.eq.s32.totalorder %s1866_s29, 1  ;;  %p196_p11 = scmp.eq.s32.totalorder %s1279_s30, 1 }
  0x35   : > { %p1875_p12 = por %p2418_p4, %p72_p0  ;;  %p1280_p13 = scmp.ge.s32.totalorder %s1714_s27, 1 }
  0x36   : > { %p2433_p1 = scmp.ne.s32.totalorder %s1710_s26, %s1706_s25  ;;  %p1887_p3 = por %p196_p11, %p72_p0 }
  0x37   : > { %s2432_s14 = scalar_select %p1875_p12, 1, 0 }
  0x38   : > { %p1883_p2 = por %p190_p10, %p2433_p1  ;;  %p229_p5 = scmp.lt.s32.totalorder %s1714_s27, 3 }
  0x39   : > { %s2435_s18 = scalar_select %p1887_p3, 1, 0 }
  0x3a   : > { %s2434_s16 = scalar_select %p1883_p2, 1, 0 }
  0x3b   : > { %2436 = sst [smem:[#allocation22_spill]] %s2435_s18  ;;  %p1892_p7 = pnand %p1280_p13, %p229_p5 }
  0x3c   : > { %s1719_s15 = smov [#allocation8]   ;;  %s1904_s20 = scalar_lea.hbm %s2401_s1, %s1817_s11 }
  0x3d   : > { %s2437_s13 = scalar_select %p1892_p7, 1, 0 }
  0x3e   : > { %s244_s17 = sshll.u32 %s1719_s15, 4  ;;  %p1366_p9 = pneg %p1892_p7  ;;  %s1896_s17 = int_to_ptr.vmem [resolvable:$true] %s244_s17 }
  0x3f   : > { %s265_s23 = scalar_lea.vmem [#allocation2], %s1814_s10  ;;  %s2439_s15 = sand.u32 1, %s1710_s26  }
  0x40   : > { %s273_s9 = sshll.u32 %s265_s23, 4  ;;  %p1909_p0 = pnand %p1366_p9, %p2418_p4  ;;  %s1913_s9 = int_to_ptr.vmem [resolvable:$true] %s273_s9 }
  0x41   : > { %s262_s8 = scalar_lea.sflag [#allocation3], %s2439_s15  ;;  %s1530_s28 = scalar_lea.hbm %s1904_s20, 512 }
  0x42   : > { %s2438_s2 = scalar_select %p1909_p0, 1, 0 }
  0x43   : > { %p1531_p10 = scmp.ne.s32.totalorder %s1904_s20, %s1530_s28  ;;  %s1535_s27 = scalar_lea.hbm %s2401_s1, 1024 }
  0x44   : > { %p1536_p1 = scmp.lt.s32.totalorder %s1904_s20, %s2401_s1  ;;  %p1537_p5 = scmp.lt.s32.totalorder %s1535_s27, %s1530_s28 }
  0x45   : > { %p1533_p11 = pnand %p1531_p10, %p1839_p8 }
  0x46   : > { %p1538_p9 = por %p1537_p5, %p1536_p1 }
  0x47   : > { %p1534_p13 = pneg %p1533_p11 }
  0x49   : > { %p1539_p4 = pnand %p1538_p9, %p1534_p13 }
  0x4b   : > { %1542 = shalt.err (!%p1539_p4)
}
  0x4c   : > { %s1543_s15 = scalar_lea.vmem %s1913_s9, 512  ;;  %s1720_s26 = smov [#allocation2]  }
  0x4d   : > { %p1544_p3 = scmp.ne.s32.totalorder %s1913_s9, %s1543_s15  ;;  %s1548_s22 = sshll.u32 %s1720_s26, 4  ;;  %s1549_s22 = int_to_ptr.vmem [resolvable:$false] %s1548_s22 }
  0x4e   : > { %s1550_s30 = scalar_lea.vmem %s1549_s22, 1024  ;;  %p1551_p2 = scmp.lt.s32.totalorder %s1913_s9, %s1549_s22 }
  0x4f   : > { %p1546_p10 = pnand %p1544_p3, %p1839_p8  ;;  %p1552_p12 = scmp.lt.s32.totalorder %s1550_s30, %s1543_s15 }
  0x51   : > { %p1547_p11 = pneg %p1546_p10  ;;  %p1553_p7 = por %p1552_p12, %p1551_p2 }
  0x53   : > { %p1554_p0 = pnand %p1553_p7, %p1547_p11 }
  0x55   : > { %1557 = shalt.err (!%p1554_p0)
}
  0x56   : > { %s2440_s27 = smov 16   ;;  %s2441_s28 = smov 256  }
  0x57   : > { %1373 = dma.hbm_to_vmem [thread:$0]  (!%p1819_p6), %s1904_s20, 512, %s1913_s9, %s262_s8, %s2441_s28, %s2441_s28, %s2440_s27  }
  0x58   : > { %s1944_s23 = scalar_lea.hbm %s2403_s3, %s1817_s11  ;;  %p2442_p4 = scmp.ne.s32.totalorder %s2438_s2, 0 }
  0x59   : > { %s1569_s15 = scalar_lea.vmem %s1896_s17, 1024  ;;  %p1577_p0 = scmp.lt.s32.totalorder %s1896_s17, %s1896_s17 }
  0x5a   : > { %p1560_p12 = pneg %p2442_p4  ;;  %p1570_p2 = scmp.ne.s32.totalorder %s1896_s17, %s1569_s15 }
  0x5b   : > { %p1578_p13 = scmp.lt.s32.totalorder %s1569_s15, %s1569_s15 }
  0x5c   : > { %p1572_p3 = pnand %p1570_p2, %p1560_p12 }
  0x5d   : > { %p1579_p1 = por %p1578_p13, %p1577_p0 }
  0x5e   : > { %p1573_p7 = pneg %p1572_p3 }
  0x60   : > { %p1580_p5 = pnand %p1579_p1, %p1573_p7 }
  0x62   : > { %1583 = shalt.err (!%p1580_p5)
}
  0x63   : > { %1369 = dma.hbm_to_vmem [thread:$0]  (!%p2442_p4), %s2404_s4, 1024, %s1896_s17, [#allocation9], %s2441_s28, %s2441_s28, %s2440_s27  }
  0x64   : > { %s309_s11 = scalar_lea.vmem [#allocation7], %s1814_s10  ;;  %s1584_s22 = scalar_lea.hbm %s1944_s23, 512 }
  0x65   : > { %s317_s20 = sshll.u32 %s309_s11, 4  ;;  %p1585_p9 = scmp.ne.s32.totalorder %s1944_s23, %s1584_s22  ;;  %s318_s20 = int_to_ptr.vmem [resolvable:$true] %s317_s20 }
  0x66   : > { %s1589_s26 = scalar_lea.hbm %s2403_s3, 1024  ;;  %p1590_p12 = scmp.lt.s32.totalorder %s1944_s23, %s2403_s3 }
  0x67   : > { %p1587_p10 = pnand %p1585_p9, %p1839_p8  ;;  %p1591_p2 = scmp.lt.s32.totalorder %s1589_s26, %s1584_s22 }
  0x69   : > { %p1588_p11 = pneg %p1587_p10  ;;  %p1592_p3 = por %p1591_p2, %p1590_p12 }
  0x6b   : > { %p1593_p7 = pnand %p1592_p3, %p1588_p11 }
  0x6d   : > { %1596 = shalt.err (!%p1593_p7)
}
  0x6e   : > { %s1597_s10 = scalar_lea.vmem %s318_s20, 512  ;;  %s1721_s17 = smov [#allocation7]  }
  0x6f   : > { %p1598_p4 = scmp.ne.s32.totalorder %s318_s20, %s1597_s10  ;;  %s1602_s8 = sshll.u32 %s1721_s17, 4  ;;  %s1603_s8 = int_to_ptr.vmem [resolvable:$false] %s1602_s8 }
  0x70   : > { %s1604_s9 = scalar_lea.vmem %s1603_s8, 1024  ;;  %p1605_p1 = scmp.lt.s32.totalorder %s318_s20, %s1603_s8 }
  0x71   : > { %p1600_p0 = pnand %p1598_p4, %p1839_p8  ;;  %p1606_p5 = scmp.lt.s32.totalorder %s1604_s9, %s1597_s10 }
  0x73   : > { %p1601_p13 = pneg %p1600_p0  ;;  %p1607_p9 = por %p1606_p5, %p1605_p1 }
  0x75   : > { %p1608_p10 = pnand %p1607_p9, %p1601_p13 }
  0x77   : > { %1611 = shalt.err (!%p1608_p10)
}
  0x78   : > { %1379 = dma.hbm_to_vmem [thread:$0]  (!%p1819_p6), %s1944_s23, 512, %s318_s20, %s1833_s19, %s2441_s28, %s2441_s28, %s2440_s27  }
  0x79   : > { %p2443_p8 = scmp.ne.s32.totalorder %s2437_s13, 0 }
  0x7a   : > { %s1985_s21 = sand.u32 (!%p2443_p8), 1, %s1706_s25   ;;  %p2444_p11 = scmp.ne.s32.totalorder (!%p2443_p8), %s2432_s14, 0 }
  0x7b   : > { %329 = sbr.rel (%p2443_p8) target bundleno = 655 (0x28f), region = 44  ;;  %s1988_s11 = sshll.u32 (!%p2443_p8), %s1985_s21, 5 }
  0x7c   : > { %s332_s22 = scalar_lea.sflag (!%p2443_p8), [#allocation3], %s1985_s21  ;;  %s335_s12 = scalar_lea.vmem (!%p2443_p8), [#allocation2], %s1988_s11 }
  0x80   : > { %1681 = dma.done.wait (%p2444_p11), %s332_s22, 512  }
  0x81   : > { %1683 = vsyncadd (%p2444_p11), %s332_s22, 4294966784  ;;  %s340_s19 = sand.u32 1, %s1866_s29   ;;  %s344_s27 = scalar_lea.vmem [#allocation5], %s1988_s11 }
  0x82   : > { %s341_s13 = scalar_lea.sflag [#allocation6], %s340_s19 }
  0x83   : > { %1685 = dma.done.wait (%p2444_p11), %s341_s13, 1024  }
  0x84   : > { %1687 = vsyncadd (%p2444_p11), %s341_s13, 4294966272  ;;  %s2003_s28 = scalar_lea.vmem [#allocation7], %s1988_s11  ;;  %p2445_p6 = scmp.eq.s32.totalorder %s1866_s29, 0 }
  0x86   : > { %1689 = dma.done.wait (%p2445_p6), [#allocation9], 1024   ;;  %p2446_p12 = pmov %p2445_p6 }
  0x87   : > { %v2009_v0 = vld [vmem:[%s344_s27 + $0x10] sm:$0xff]  ;;  %v2011_v1 = vld [vmem:[%s344_s27] sm:$0xff]  ;;  %s1722_s23 = smov 112   ;;  %v2015_v2 = vld [vmem:[%s344_s27 + $0x18] sm:$0xff]  ;;  %s1723_s14 = smov 113   ;;  %v434_v8 = vlaneseq  ;;  %vm648_vm0 = vcmask 130048  }
  0x88   : > { %1691 = vsyncadd (%p2446_p12), [#allocation9], 4294966272  ;;  %908 = vrot.lane.b32.xlu1 %v2009_v0, %s1722_s23  ;;  %580 = vrot.lane.b32.xlu0 %v2011_v1, %s1722_s23  ;;  %v2017_v3 = vld [vmem:[%s344_s27 + $0x8] sm:$0xff]  ;;  %v2023_v5 = vld [vmem:[%s335_s12] sm:$0xff]  ;;  %s1724_s20 = smov 127   ;;  %s1725_s2 = smov 1  }
  0x89   : > { %v2021_v4 = vld [vmem:[%s335_s12 + $0x8] sm:$0xff]  ;;  %v2027_v6 = vld [vmem:[%s335_s12 + $0x18] sm:$0xff]  ;;  %v2029_v7 = vld [vmem:[%s335_s12 + $0x10] sm:$0xff]  ;;  %s1726_s30 = smov 15   ;;  %s1727_s26 = smov 16   ;;  %v2089_v9 = vshrl.u32 %v434_v8, 7 }
  0x8a   : > { %s1728_s18 = smov 17   ;;  %v411_v10 = vld [vmem:[#allocation8 + $0x8] sm:$0xff]  ;;  %s1729_s15 = smov 111   ;;  %v2095_v11 = vand.u32 127, %v434_v8  ;;  %v2101_v13 = vld [vmem:[%s2400_s0] sm:$0xff]  ;;  %v1730_v46 = vmov 0  }
  0x8b   : > { %v593_v12 = vsub.s32 6, %v2089_v9  ;;  %v2106_v14 = vld [vmem:[%s2400_s0 + $0x8] sm:$0xff]  ;;  %1302 = vmatprep.mubr.msk.f32.mxu0 %vm648_vm0, %v411_v10  ;;  %1316 = vmatprep.mubr.msk.f32.mxu1 %vm648_vm0, %v411_v10  ;;  %v568_v33 = vsub.s32 5, %v2089_v9  ;;  %v418_v44 = vld [vmem:[%s2405_s5] sm:$0xff]  ;;  %v421_v51 = vld [vmem:[%s2405_s5 + $0x18] sm:$0xff]  ;;  %s1090_s17 = scalar_lea.sflag [#allocation12], %s1985_s21 }
  0x8c   : > { %912 = vrot.lane.b32.xlu1 %v2015_v2, %s1722_s23  ;;  %584 = vrot.lane.b32.xlu0 %v2017_v3, %s1722_s23  ;;  %vm586_vm1 = vcmp.lt.s32.totalorder %v2095_v11, 112  ;;  %vm561_vm2 = vcmp.lt.s32.totalorder %v2095_v11, 113  ;;  %v419_v45 = vld [vmem:[%s2405_s5 + $0x8] sm:$0xff]  ;;  %v420_v54 = vld [vmem:[%s2405_s5 + $0x10] sm:$0xff]  ;;  %vm536_vm3 = vcmp.lt.s32.totalorder %v2095_v11, 127  ;;  %vm511_vm4 = vcmp.lt.s32.totalorder %v2095_v11, 1 }
  0x8d   : > { %v594_v17 = vrot.slane %v2101_v13, %v593_v12  ;;  %v598_v18 = vrot.slane %v2106_v14, %v593_v12  ;;  %v569_v40 = vrot.slane %v2101_v13, %v568_v33  ;;  %v573_v43 = vrot.slane %v2106_v14, %v568_v33  ;;  %1436 = vset.pattern.permute.xlu0 %v1730_v46  ;;  %p2447_p3 = scmp.ne.s32.totalorder %s2434_s16, 0  ;;  %s1731_s9 = smov [#allocation11]  }
  0x8e   : > { %1437 = vset.pattern.permute.xlu1 %v1730_v46  ;;  %vm486_vm5 = vcmp.lt.s32.totalorder %v2095_v11, 15  ;;  %vm461_vm6 = vcmp.lt.s32.totalorder %v2095_v11, 16  ;;  %vm436_vm7 = vcmp.lt.s32.totalorder %v2095_v11, 17  ;;  %vm611_vm8 = vcmp.lt.s32.totalorder %v2095_v11, 111  ;;  %v416_v11 = vld [vmem:[#allocation8 + $0x30] sm:$0xff]  ;;  %s1616_s22 = sshll.u32 %s1731_s9, 4  ;;  %s1617_s22 = int_to_ptr.vmem [resolvable:$false] %s1616_s22 }
  0x8f   : > { %s1618_s12 = scalar_lea.vmem %s1617_s22, 1024 }
  0x90   : > { %582 = vrot.lane.b32.xlu1 %v2021_v4, %s1722_s23  ;;  %578 = vrot.lane.b32.xlu0 %v2023_v5, %s1722_s23 }
  0x94   : > { %910 = vrot.lane.b32.xlu1 %v2027_v6, %s1722_s23  ;;  %906 = vrot.lane.b32.xlu0 %v2029_v7, %s1722_s23 }
  0x98   : > { %559 = vrot.lane.b32.xlu1 %v2017_v3, %s1723_s14  ;;  %555 = vrot.lane.b32.xlu0 %v2011_v1, %s1723_s14 }
  0x9c   : > { %896 = vrot.lane.b32.xlu1 %v2015_v2, %s1723_s14  ;;  %892 = vrot.lane.b32.xlu0 %v2009_v0, %s1723_s14 }
  0xa0   : > { %557 = vrot.lane.b32.xlu1 %v2021_v4, %s1723_s14  ;;  %553 = vrot.lane.b32.xlu0 %v2023_v5, %s1723_s14 }
  0xa4   : > { %894 = vrot.lane.b32.xlu1 %v2027_v6, %s1723_s14  ;;  %890 = vrot.lane.b32.xlu0 %v2029_v7, %s1723_s14 }
  0xa8   : > { %534 = vrot.lane.b32.xlu1 %v2017_v3, %s1724_s20  ;;  %530 = vrot.lane.b32.xlu0 %v2011_v1, %s1724_s20 }
  0xac   : > { %880 = vrot.lane.b32.xlu1 %v2015_v2, %s1724_s20  ;;  %876 = vrot.lane.b32.xlu0 %v2009_v0, %s1724_s20 }
  0xb0   : > { %532 = vrot.lane.b32.xlu1 %v2021_v4, %s1724_s20  ;;  %528 = vrot.lane.b32.xlu0 %v2023_v5, %s1724_s20 }
  0xb4   : > { %878 = vrot.lane.b32.xlu1 %v2027_v6, %s1724_s20  ;;  %874 = vrot.lane.b32.xlu0 %v2029_v7, %s1724_s20 }
  0xb8   : > { %509 = vrot.lane.b32.xlu1 %v2017_v3, %s1725_s2  ;;  %505 = vrot.lane.b32.xlu0 %v2011_v1, %s1725_s2 }
  0xbc   : > { %864 = vrot.lane.b32.xlu1 %v2015_v2, %s1725_s2  ;;  %860 = vrot.lane.b32.xlu0 %v2009_v0, %s1725_s2 }
  0xc0   : > { %507 = vrot.lane.b32.xlu1 %v2021_v4, %s1725_s2  ;;  %503 = vrot.lane.b32.xlu0 %v2023_v5, %s1725_s2 }
  0xc4   : > { %862 = vrot.lane.b32.xlu1 %v2027_v6, %s1725_s2  ;;  %858 = vrot.lane.b32.xlu0 %v2029_v7, %s1725_s2  ;;  %s402_s2 = scalar_lea.vmem [#allocation11], %s1988_s11 }
  0xc8   : > { %484 = vrot.lane.b32.xlu1 %v2017_v3, %s1726_s30  ;;  %480 = vrot.lane.b32.xlu0 %v2011_v1, %s1726_s30 }
  0xcc   : > { %848 = vrot.lane.b32.xlu1 %v2015_v2, %s1726_s30  ;;  %844 = vrot.lane.b32.xlu0 %v2009_v0, %s1726_s30 }
  0xd0   : > { %482 = vrot.lane.b32.xlu1 %v2021_v4, %s1726_s30  ;;  %478 = vrot.lane.b32.xlu0 %v2023_v5, %s1726_s30 }
  0xd4   : > { %846 = vrot.lane.b32.xlu1 %v2027_v6, %s1726_s30  ;;  %842 = vrot.lane.b32.xlu0 %v2029_v7, %s1726_s30  ;;  %s1349_s30 = sshll.u32 %s1866_s29, 9 }
  0xd5   : > { %s2318_s10 = scalar_lea.hbm %s2407_s7, %s1349_s30 }
  0xd8   : > { %459 = vrot.lane.b32.xlu1 %v2017_v3, %s1727_s26  ;;  %455 = vrot.lane.b32.xlu0 %v2011_v1, %s1727_s26 }
  0xdc   : > { %832 = vrot.lane.b32.xlu1 %v2015_v2, %s1727_s26  ;;  %828 = vrot.lane.b32.xlu0 %v2009_v0, %s1727_s26 }
  0xe0   : > { %457 = vrot.lane.b32.xlu1 %v2021_v4, %s1727_s26  ;;  %453 = vrot.lane.b32.xlu0 %v2023_v5, %s1727_s26 }
  0xe4   : > { %830 = vrot.lane.b32.xlu1 %v2027_v6, %s1727_s26  ;;  %826 = vrot.lane.b32.xlu0 %v2029_v7, %s1727_s26 }
  0xe8   : > { %432 = vrot.lane.b32.xlu1 %v2017_v3, %s1728_s18  ;;  %428 = vrot.lane.b32.xlu0 %v2011_v1, %s1728_s18 }
  0xec   : > { %816 = vrot.lane.b32.xlu1 %v2015_v2, %s1728_s18  ;;  %812 = vrot.lane.b32.xlu0 %v2009_v0, %s1728_s18 }
  0xf0   : > { %430 = vrot.lane.b32.xlu1 %v2021_v4, %s1728_s18  ;;  %426 = vrot.lane.b32.xlu0 %v2023_v5, %s1728_s18 }
  0xf4   : > { %814 = vrot.lane.b32.xlu1 %v2027_v6, %s1728_s18  ;;  %810 = vrot.lane.b32.xlu0 %v2029_v7, %s1728_s18  ;;  %s1121_s18 = sshll.u32 %s402_s2, 4  ;;  %s2320_s18 = int_to_ptr.vmem [resolvable:$true] %s1121_s18 }
  0xf5   : > { %s1612_s8 = scalar_lea.vmem %s2320_s18, 512  ;;  %p1619_p0 = scmp.lt.s32.totalorder %s2320_s18, %s1617_s22 }
  0xf6   : > { %p1613_p2 = scmp.ne.s32.totalorder %s2320_s18, %s1612_s8  ;;  %p1620_p13 = scmp.lt.s32.totalorder %s1618_s12, %s1612_s8 }
  0xf8   : > { %609 = vrot.lane.b32.xlu1 %v2017_v3, %s1729_s15  ;;  %605 = vrot.lane.b32.xlu0 %v2011_v1, %s1729_s15  ;;  %p1614_p7 = pnand %p1613_p2, %p2447_p3  ;;  %p1621_p1 = por %p1620_p13, %p1619_p0 }
  0xfa   : > { %v909_v15 = vpop.permute.xlu1 %908  ;;  %v581_v16 = vpop.permute.xlu0 %580  ;;  %p1615_p4 = pneg %p1614_p7 }
  0xfc   : > { %928 = vrot.lane.b32.xlu1 %v2015_v2, %s1729_s15  ;;  %924 = vrot.lane.b32.xlu0 %v2009_v0, %s1729_s15  ;;  %p1622_p5 = pnand %p1621_p1, %p1615_p4 }
  0xfe   : > { %v913_v19 = vpop.permute.xlu1 %912  ;;  %v585_v20 = vpop.permute.xlu0 %584 }
  0xff   : > { %v915_v21 = vsel %vm586_vm1, %v909_v15, %v913_v19  ;;  %v588_v22 = vsel %vm586_vm1, %v581_v16, %v585_v20  ;;  %v590_v23 = vsel %vm586_vm1, %v585_v20, %v581_v16  ;;  %v917_v24 = vsel %vm586_vm1, %v913_v19, %v909_v15 }
 0x100   : > { %607 = vrot.lane.b32.xlu1 %v2021_v4, %s1729_s15  ;;  %603 = vrot.lane.b32.xlu0 %v2023_v5, %s1729_s15  ;;  %v602_v25 = vmul.f32 %v598_v18, %v590_v23  ;;  %v921_v26 = vmul.f32 %v917_v24, %v598_v18  ;;  %v601_v27 = vmul.f32 %v594_v17, %v588_v22  ;;  %v543_v15 = vsub.s32 4, %v2089_v9 }
 0x101   : > { %v920_v28 = vmul.f32 %v915_v21, %v594_v17 }
 0x102   : > { %v583_v29 = vpop.permute.xlu1 %582  ;;  %v579_v30 = vpop.permute.xlu0 %578  ;;  %661 = vmatprep.subr.mxu0 %v602_v25  ;;  %938 = vmatprep.subr.mxu1 %v921_v26  ;;  %v544_v22 = vrot.slane %v2101_v13, %v543_v15  ;;  %v548_v23 = vrot.slane %v2106_v14, %v543_v15 }
 0x103   : > { %v587_v31 = vsel %vm586_vm1, %v579_v30, %v583_v29  ;;  %v589_v32 = vsel %vm586_vm1, %v583_v29, %v579_v30  ;;  %662 = vmatpush1.msra.mxu0 %v601_v27  ;;  %939 = vmatpush1.msra.mxu1 %v920_v28 }
 0x104   : > { %v599_v34 = vmul.f32 %v594_v17, %v587_v31  ;;  %v600_v35 = vmul.f32 %v598_v18, %v589_v32  ;;  %926 = vrot.lane.b32.xlu1 %v2027_v6, %s1729_s15  ;;  %922 = vrot.lane.b32.xlu0 %v2029_v7, %s1729_s15 }
 0x106   : > { %v911_v36 = vpop.permute.xlu1 %910  ;;  %v907_v37 = vpop.permute.xlu0 %906  ;;  %663 = vmatprep.subr.mxu0 %v600_v35 }
 0x107   : > { %v914_v38 = vsel %vm586_vm1, %v907_v37, %v911_v36  ;;  %v916_v39 = vsel %vm586_vm1, %v911_v36, %v907_v37  ;;  %664 = vmatpush1.msra.mxu0 %v599_v34 }
 0x108   : > { %v918_v41 = vmul.f32 %v914_v38, %v594_v17  ;;  %v919_v42 = vmul.f32 %v916_v39, %v598_v18  ;;  %630 = vperm.xlu0 %1436, %v418_v44   ;;  %635 = vperm.xlu1 %1437, %v419_v45  }
 0x10a   : > { %v560_v47 = vpop.permute.xlu1 %559  ;;  %v556_v48 = vpop.permute.xlu0 %555  ;;  %940 = vmatprep.subr.mxu1 %v919_v42  ;;  %v518_v42 = vsub.s32 3, %v2089_v9 }
 0x10b   : > { %v563_v49 = vsel %vm561_vm2, %v556_v48, %v560_v47  ;;  %v565_v50 = vsel %vm561_vm2, %v560_v47, %v556_v48  ;;  %941 = vmatpush1.msra.mxu1 %v918_v41 }
 0x10c   : > { %v576_v52 = vmul.f32 %v569_v40, %v563_v49  ;;  %v577_v53 = vmul.f32 %v573_v43, %v565_v50  ;;  %645 = vperm.xlu0 %1436, %v421_v51   ;;  %640 = vperm.xlu1 %1437, %v420_v54   ;;  %v519_v49 = vrot.slane %v2101_v13, %v518_v42 }
 0x10d   : > { %v523_v50 = vrot.slane %v2106_v14, %v518_v42 }
 0x10e   : > { %v897_v55 = vpop.permute.xlu1 %896  ;;  %v893_v56 = vpop.permute.xlu0 %892  ;;  %665 = vmatprep.subr.mxu0 %v577_v53 }
 0x10f   : > { %v899_v57 = vsel %vm561_vm2, %v893_v56, %v897_v55  ;;  %v901_v58 = vsel %vm561_vm2, %v897_v55, %v893_v56  ;;  %666 = vmatpush1.msra.mxu0 %v576_v52 }
 0x110   : > { %v904_v59 = vmul.f32 %v899_v57, %v569_v40  ;;  %v905_v60 = vmul.f32 %v901_v58, %v573_v43 }
 0x112   : > { %v558_v61 = vpop.permute.xlu1 %557  ;;  %v554_v62 = vpop.permute.xlu0 %553  ;;  %942 = vmatprep.subr.mxu1 %v905_v60 }
 0x113   : > { %v562_v63 = vsel %vm561_vm2, %v554_v62, %v558_v61  ;;  %v564_v8 = vsel %vm561_vm2, %v558_v61, %v554_v62  ;;  %943 = vmatpush1.msra.mxu1 %v904_v59  ;;  %v493_v62 = vsub.s32 2, %v2089_v9 }
 0x114   : > { %v574_v10 = vmul.f32 %v569_v40, %v562_v63  ;;  %v575_v12 = vmul.f32 %v573_v43, %v564_v8 }
 0x116   : > { %v895_v16 = vpop.permute.xlu1 %894  ;;  %v891_v17 = vpop.permute.xlu0 %890  ;;  %667 = vmatprep.subr.mxu0 %v575_v12 }
 0x117   : > { %v898_v18 = vsel %vm561_vm2, %v891_v17, %v895_v16  ;;  %v900_v19 = vsel %vm561_vm2, %v895_v16, %v891_v17  ;;  %668 = vmatpush1.msra.mxu0 %v574_v10  ;;  %v494_v16 = vrot.slane %v2101_v13, %v493_v62  ;;  %v498_v17 = vrot.slane %v2106_v14, %v493_v62 }
 0x118   : > { %v902_v20 = vmul.f32 %v898_v18, %v569_v40  ;;  %v903_v21 = vmul.f32 %v900_v19, %v573_v43 }
 0x11a   : > { %v535_v24 = vpop.permute.xlu1 %534  ;;  %v531_v25 = vpop.permute.xlu0 %530  ;;  %944 = vmatprep.subr.mxu1 %v903_v21 }
 0x11b   : > { %v538_v26 = vsel %vm536_vm3, %v531_v25, %v535_v24  ;;  %v540_v27 = vsel %vm536_vm3, %v535_v24, %v531_v25  ;;  %945 = vmatpush1.msra.mxu1 %v902_v20 }
 0x11c   : > { %v551_v28 = vmul.f32 %v544_v22, %v538_v26  ;;  %v552_v29 = vmul.f32 %v548_v23, %v540_v27 }
 0x11e   : > { %v881_v30 = vpop.permute.xlu1 %880  ;;  %v877_v31 = vpop.permute.xlu0 %876  ;;  %669 = vmatprep.subr.mxu0 %v552_v29 }
 0x11f   : > { %v883_v32 = vsel %vm536_vm3, %v877_v31, %v881_v30  ;;  %v885_v33 = vsel %vm536_vm3, %v881_v30, %v877_v31  ;;  %670 = vmatpush1.msra.mxu0 %v551_v28 }
 0x120   : > { %v888_v34 = vmul.f32 %v883_v32, %v544_v22  ;;  %v889_v35 = vmul.f32 %v885_v33, %v548_v23 }
 0x122   : > { %v533_v36 = vpop.permute.xlu1 %532  ;;  %v529_v37 = vpop.permute.xlu0 %528  ;;  %946 = vmatprep.subr.mxu1 %v889_v35 }
 0x123   : > { %v537_v38 = vsel %vm536_vm3, %v529_v37, %v533_v36  ;;  %v539_v39 = vsel %vm536_vm3, %v533_v36, %v529_v37  ;;  %947 = vmatpush1.msra.mxu1 %v888_v34  ;;  %v468_v36 = vsub.s32 1, %v2089_v9 }
 0x124   : > { %v549_v40 = vmul.f32 %v544_v22, %v537_v38  ;;  %v550_v41 = vmul.f32 %v548_v23, %v539_v39 }
 0x126   : > { %v879_v43 = vpop.permute.xlu1 %878  ;;  %v875_v44 = vpop.permute.xlu0 %874  ;;  %671 = vmatprep.subr.mxu0 %v550_v41 }
 0x127   : > { %v882_v45 = vsel %vm536_vm3, %v875_v44, %v879_v43  ;;  %v884_v46 = vsel %vm536_vm3, %v879_v43, %v875_v44  ;;  %672 = vmatpush1.msra.mxu0 %v549_v40  ;;  %v469_v43 = vrot.slane %v2101_v13, %v468_v36  ;;  %v473_v44 = vrot.slane %v2106_v14, %v468_v36 }
 0x128   : > { %v886_v47 = vmul.f32 %v882_v45, %v544_v22  ;;  %v887_v48 = vmul.f32 %v884_v46, %v548_v23  ;;  %673 = vmatprep.subr.mxu0 %v2017_v3 }
 0x129   : > { %674 = vmatpush1.msra.mxu0 %v2011_v1 }
 0x12a   : > { %v510_v51 = vpop.permute.xlu1 %509  ;;  %v506_v52 = vpop.permute.xlu0 %505  ;;  %948 = vmatprep.subr.mxu1 %v887_v48  ;;  %675 = vmatprep.subr.mxu0 %v2021_v4 }
 0x12b   : > { %v513_v53 = vsel %vm511_vm4, %v506_v52, %v510_v51  ;;  %v515_v54 = vsel %vm511_vm4, %v510_v51, %v506_v52  ;;  %949 = vmatpush1.msra.mxu1 %v886_v47  ;;  %676 = vmatpush1.msra.mxu0 %v2023_v5 }
 0x12c   : > { %v526_v55 = vmul.f32 %v519_v49, %v515_v54  ;;  %v527_v56 = vmul.f32 %v523_v50, %v513_v53  ;;  %950 = vmatprep.subr.mxu1 %v2015_v2 }
 0x12d   : > { %951 = vmatpush1.msra.mxu1 %v2009_v0 }
 0x12e   : > { %v865_v1 = vpop.permute.xlu1 %864  ;;  %v861_v3 = vpop.permute.xlu0 %860  ;;  %677 = vmatprep.subr.mxu0 %v527_v56  ;;  %952 = vmatprep.subr.mxu1 %v2027_v6 }
 0x12f   : > { %v867_v4 = vsel %vm511_vm4, %v861_v3, %v865_v1  ;;  %v869_v57 = vsel %vm511_vm4, %v865_v1, %v861_v3  ;;  %678 = vmatpush1.msra.mxu0 %v526_v55  ;;  %953 = vmatpush1.msra.mxu1 %v2029_v7 }
 0x130   : > { %v872_v5 = vmul.f32 %v869_v57, %v519_v49  ;;  %v873_v58 = vmul.f32 %v867_v4, %v523_v50 }
 0x132   : > { %v508_v59 = vpop.permute.xlu1 %507  ;;  %v504_v2 = vpop.permute.xlu0 %503  ;;  %954 = vmatprep.subr.mxu1 %v873_v58 }
 0x133   : > { %v512_v0 = vsel %vm511_vm4, %v504_v2, %v508_v59  ;;  %v514_v6 = vsel %vm511_vm4, %v508_v59, %v504_v2  ;;  %955 = vmatpush1.msra.mxu1 %v872_v5  ;;  %v443_v59 = vsub.s32 0, %v2089_v9 }
 0x134   : > { %v524_v60 = vmul.f32 %v519_v49, %v514_v6  ;;  %v525_v61 = vmul.f32 %v523_v50, %v512_v0 }
 0x136   : > { %v863_v63 = vpop.permute.xlu1 %862  ;;  %v859_v8 = vpop.permute.xlu0 %858  ;;  %679 = vmatprep.subr.mxu0 %v525_v61 }
 0x137   : > { %v866_v7 = vsel %vm511_vm4, %v859_v8, %v863_v63  ;;  %v868_v10 = vsel %vm511_vm4, %v863_v63, %v859_v8  ;;  %680 = vmatpush1.msra.mxu0 %v524_v60  ;;  %v444_v63 = vrot.slane %v2101_v13, %v443_v59  ;;  %v448_v8 = vrot.slane %v2106_v14, %v443_v59  ;;  %v415_v59 = vld [vmem:[#allocation8 + $0x28] sm:$0xff] }
 0x138   : > { %v870_v12 = vmul.f32 %v868_v10, %v519_v49  ;;  %v871_v15 = vmul.f32 %v866_v7, %v523_v50 }
 0x13a   : > { %v485_v18 = vpop.permute.xlu1 %484  ;;  %v481_v19 = vpop.permute.xlu0 %480  ;;  %956 = vmatprep.subr.mxu1 %v871_v15 }
 0x13b   : > { %v488_v20 = vsel %vm486_vm5, %v481_v19, %v485_v18  ;;  %v490_v21 = vsel %vm486_vm5, %v485_v18, %v481_v19  ;;  %957 = vmatpush1.msra.mxu1 %v870_v12 }
 0x13c   : > { %v501_v22 = vmul.f32 %v494_v16, %v490_v21  ;;  %v502_v23 = vmul.f32 %v498_v17, %v488_v20 }
 0x13e   : > { %v849_v24 = vpop.permute.xlu1 %848  ;;  %v845_v25 = vpop.permute.xlu0 %844  ;;  %681 = vmatprep.subr.mxu0 %v502_v23 }
 0x13f   : > { %v851_v26 = vsel %vm486_vm5, %v845_v25, %v849_v24  ;;  %v853_v27 = vsel %vm486_vm5, %v849_v24, %v845_v25  ;;  %682 = vmatpush1.msra.mxu0 %v501_v22 }
 0x140   : > { %v856_v28 = vmul.f32 %v853_v27, %v494_v16  ;;  %v857_v29 = vmul.f32 %v851_v26, %v498_v17 }
 0x142   : > { %v483_v30 = vpop.permute.xlu1 %482  ;;  %v479_v31 = vpop.permute.xlu0 %478  ;;  %958 = vmatprep.subr.mxu1 %v857_v29 }
 0x143   : > { %v487_v32 = vsel %vm486_vm5, %v479_v31, %v483_v30  ;;  %v489_v33 = vsel %vm486_vm5, %v483_v30, %v479_v31  ;;  %959 = vmatpush1.msra.mxu1 %v856_v28  ;;  %v618_v30 = vsub.s32 7, %v2089_v9 }
 0x144   : > { %v499_v34 = vmul.f32 %v494_v16, %v489_v33  ;;  %v500_v35 = vmul.f32 %v498_v17, %v487_v32 }
 0x146   : > { %v847_v37 = vpop.permute.xlu1 %846  ;;  %v843_v38 = vpop.permute.xlu0 %842  ;;  %683 = vmatprep.subr.mxu0 %v500_v35 }
 0x147   : > { %v850_v39 = vsel %vm486_vm5, %v843_v38, %v847_v37  ;;  %v852_v40 = vsel %vm486_vm5, %v847_v37, %v843_v38  ;;  %684 = vmatpush1.msra.mxu0 %v499_v34  ;;  %v619_v37 = vrot.slane %v2101_v13, %v618_v30  ;;  %v623_v38 = vrot.slane %v2106_v14, %v618_v30 }
 0x148   : > { %v854_v41 = vmul.f32 %v852_v40, %v494_v16  ;;  %v855_v42 = vmul.f32 %v850_v39, %v498_v17 }
 0x14a   : > { %v460_v45 = vpop.permute.xlu1 %459  ;;  %v456_v46 = vpop.permute.xlu0 %455  ;;  %960 = vmatprep.subr.mxu1 %v855_v42 }
 0x14b   : > { %v463_v47 = vsel %vm461_vm6, %v456_v46, %v460_v45  ;;  %v465_v48 = vsel %vm461_vm6, %v460_v45, %v456_v46  ;;  %961 = vmatpush1.msra.mxu1 %v854_v41 }
 0x14c   : > { %v476_v49 = vmul.f32 %v469_v43, %v465_v48  ;;  %v477_v50 = vmul.f32 %v473_v44, %v463_v47 }
 0x14e   : > { %v833_v51 = vpop.permute.xlu1 %832  ;;  %v829_v52 = vpop.permute.xlu0 %828  ;;  %685 = vmatprep.subr.mxu0 %v477_v50 }
 0x14f   : > { %v835_v53 = vsel %vm461_vm6, %v829_v52, %v833_v51  ;;  %v837_v54 = vsel %vm461_vm6, %v833_v51, %v829_v52  ;;  %686 = vmatpush1.msra.mxu0 %v476_v49 }
 0x150   : > { %v840_v55 = vmul.f32 %v837_v54, %v469_v43  ;;  %v841_v56 = vmul.f32 %v835_v53, %v473_v44  ;;  %v410_v54 = vld [vmem:[#allocation8] sm:$0xff] }
 0x152   : > { %v458_v1 = vpop.permute.xlu1 %457  ;;  %v454_v3 = vpop.permute.xlu0 %453  ;;  %962 = vmatprep.subr.mxu1 %v841_v56 }
 0x153   : > { %v462_v4 = vsel %vm461_vm6, %v454_v3, %v458_v1  ;;  %v464_v57 = vsel %vm461_vm6, %v458_v1, %v454_v3  ;;  %963 = vmatpush1.msra.mxu1 %v840_v55  ;;  %v413_v1 = vld [vmem:[#allocation8 + $0x18] sm:$0xff] }
 0x154   : > { %v474_v5 = vmul.f32 %v469_v43, %v464_v57  ;;  %v475_v58 = vmul.f32 %v473_v44, %v462_v4 }
 0x156   : > { %v831_v2 = vpop.permute.xlu1 %830  ;;  %v827_v0 = vpop.permute.xlu0 %826  ;;  %687 = vmatprep.subr.mxu0 %v475_v58  ;;  %v412_v58 = vld [vmem:[#allocation8 + $0x10] sm:$0xff] }
 0x157   : > { %v834_v6 = vsel %vm461_vm6, %v827_v0, %v831_v2  ;;  %v836_v60 = vsel %vm461_vm6, %v831_v2, %v827_v0  ;;  %688 = vmatpush1.msra.mxu0 %v474_v5  ;;  %v414_v2 = vld [vmem:[#allocation8 + $0x20] sm:$0xff]  ;;  %v417_v0 = vld [vmem:[#allocation8 + $0x38] sm:$0xff] }
 0x158   : > { %v838_v61 = vmul.f32 %v836_v60, %v469_v43  ;;  %v839_v62 = vmul.f32 %v834_v6, %v473_v44 }
 0x15a   : > { %v433_v7 = vpop.permute.xlu1 %432  ;;  %v429_v10 = vpop.permute.xlu0 %428  ;;  %964 = vmatprep.subr.mxu1 %v839_v62 }
 0x15b   : > { %v438_v12 = vsel %vm436_vm7, %v429_v10, %v433_v7  ;;  %v440_v15 = vsel %vm436_vm7, %v433_v7, %v429_v10  ;;  %965 = vmatpush1.msra.mxu1 %v838_v61 }
 0x15c   : > { %v451_v16 = vmul.f32 %v444_v63, %v440_v15  ;;  %v452_v17 = vmul.f32 %v448_v8, %v438_v12 }
 0x15e   : > { %v817_v18 = vpop.permute.xlu1 %816  ;;  %v813_v19 = vpop.permute.xlu0 %812  ;;  %689 = vmatprep.subr.mxu0 %v452_v17 }
 0x15f   : > { %v819_v20 = vsel %vm436_vm7, %v813_v19, %v817_v18  ;;  %v821_v21 = vsel %vm436_vm7, %v817_v18, %v813_v19  ;;  %690 = vmatpush1.msra.mxu0 %v451_v16 }
 0x160   : > { %v824_v22 = vmul.f32 %v821_v21, %v444_v63  ;;  %v825_v23 = vmul.f32 %v819_v20, %v448_v8 }
 0x162   : > { %v431_v24 = vpop.permute.xlu1 %430  ;;  %v427_v25 = vpop.permute.xlu0 %426  ;;  %966 = vmatprep.subr.mxu1 %v825_v23 }
 0x163   : > { %v437_v26 = vsel %vm436_vm7, %v427_v25, %v431_v24  ;;  %v439_v27 = vsel %vm436_vm7, %v431_v24, %v427_v25  ;;  %967 = vmatpush1.msra.mxu1 %v824_v22 }
 0x164   : > { %v449_v28 = vmul.f32 %v444_v63, %v439_v27  ;;  %v450_v29 = vmul.f32 %v448_v8, %v437_v26 }
 0x166   : > { %v815_v31 = vpop.permute.xlu1 %814  ;;  %v811_v32 = vpop.permute.xlu0 %810  ;;  %691 = vmatprep.subr.mxu0 %v450_v29 }
 0x167   : > { %v818_v33 = vsel %vm436_vm7, %v811_v32, %v815_v31  ;;  %v820_v34 = vsel %vm436_vm7, %v815_v31, %v811_v32  ;;  %692 = vmatpush1.msra.mxu0 %v449_v28 }
 0x168   : > { %v822_v35 = vmul.f32 %v820_v34, %v444_v63  ;;  %v823_v36 = vmul.f32 %v818_v33, %v448_v8 }
 0x16a   : > { %v610_v39 = vpop.permute.xlu1 %609  ;;  %v606_v9 = vpop.permute.xlu0 %605  ;;  %968 = vmatprep.subr.mxu1 %v823_v36 }
 0x16b   : > { %v613_v40 = vsel %vm611_vm8, %v606_v9, %v610_v39  ;;  %v615_v41 = vsel %vm611_vm8, %v610_v39, %v606_v9  ;;  %969 = vmatpush1.msra.mxu1 %v822_v35 }
 0x16c   : > { %v626_v42 = vmul.f32 %v619_v37, %v613_v40  ;;  %v627_v43 = vmul.f32 %v623_v38, %v615_v41 }
 0x16e   : > { %v929_v44 = vpop.permute.xlu1 %928  ;;  %v925_v45 = vpop.permute.xlu0 %924  ;;  %721 = vmatprep.subr.mxu0 %v627_v43 }
 0x16f   : > { %v931_v13 = vsel %vm611_vm8, %v925_v45, %v929_v44  ;;  %v933_v14 = vsel %vm611_vm8, %v929_v44, %v925_v45  ;;  %722 = vmatpush2.msra.mxu0 %v626_v42 }
 0x170   : > { %v936_v46 = vmul.f32 %v931_v13, %v619_v37  ;;  %v937_v47 = vmul.f32 %v933_v14, %v623_v38 }
 0x172   : > { %v608_v48 = vpop.permute.xlu1 %607  ;;  %v604_v49 = vpop.permute.xlu0 %603  ;;  %998 = vmatprep.subr.mxu1 %v937_v47 }
 0x173   : > { %v612_v50 = vsel %vm611_vm8, %v604_v49, %v608_v48  ;;  %v614_v51 = vsel %vm611_vm8, %v608_v48, %v604_v49  ;;  %999 = vmatpush2.msra.mxu1 %v936_v46 }
 0x174   : > { %v624_v52 = vmul.f32 %v619_v37, %v612_v50  ;;  %v625_v53 = vmul.f32 %v623_v38, %v614_v51 }
 0x176   : > { %v927_v55 = vpop.permute.xlu1 %926  ;;  %v923_v56 = vpop.permute.xlu0 %922  ;;  %723 = vmatprep.subr.mxu0 %v625_v53 }
 0x177   : > { %v930_v3 = vsel %vm611_vm8, %v923_v56, %v927_v55  ;;  %v932_v4 = vsel %vm611_vm8, %v927_v55, %v923_v56  ;;  %724 = vmatpush2.msra.mxu0 %v624_v52 }
 0x178   : > { %v934_v57 = vmul.f32 %v930_v3, %v619_v37  ;;  %v935_v5 = vmul.f32 %v932_v4, %v623_v38  ;;  %726 = vmatmul.mubr.f32.vlgmr.msra.gmra.mxu0 %v410_v54 }
 0x179   : > { %1303 = vmatprep.mubr.msk.f32.mxu0 %vm648_vm0, %v413_v1 }
 0x17a   : > { %1000 = vmatprep.subr.mxu1 %v935_v5 }
 0x17b   : > { %1001 = vmatpush2.msra.mxu1 %v934_v57 }
 0x17c   : > { %732 = vmatmul.mubr.f32.gmra.mxu0 %v412_v58  ;;  %1003 = vmatmul.mubr.f32.vlgmr.msra.gmra.mxu1 %v410_v54 }
 0x17d   : > { %1304 = vmatprep.mubr.msk.f32.mxu0 %vm648_vm0, %v415_v59  ;;  %1317 = vmatprep.mubr.msk.f32.mxu1 %vm648_vm0, %v413_v1 }
 0x180   : > { %738 = vmatmul.mubr.f32.gmra.mxu0 %v414_v2  ;;  %1009 = vmatmul.mubr.f32.gmra.mxu1 %v412_v58 }
 0x181   : > { %1305 = vmatprep.mubr.msk.f32.mxu0 %vm648_vm0, %v417_v0  ;;  %1318 = vmatprep.mubr.msk.f32.mxu1 %vm648_vm0, %v415_v59 }
 0x183   : > { %v631_v6 = vpop.permute.xlu0 %630  ;;  %v636_v62 = vpop.permute.xlu1 %635 }
 0x184   : > { %744 = vmatmul.mubr.f32.gmra.mxu0 %v416_v11  ;;  %1015 = vmatmul.mubr.f32.gmra.mxu1 %v414_v2 }
 0x185   : > { %1319 = vmatprep.mubr.msk.f32.mxu1 %vm648_vm0, %v417_v0 }
 0x187   : > { %v641_v18 = vpop.permute.xlu1 %640  ;;  %v646_v39 = vpop.permute.xlu0 %645 }
 0x188   : > { %1021 = vmatmul.mubr.f32.gmra.mxu1 %v416_v11 }
 0x238   : > { %v727_v60 = vpop.f32.mrf.mxu0 }
 0x239   : > { %v728_v61 = vadd.f32 %v727_v60, %v631_v6 }
 0x23a   : > { %v729_v63 = vpop.f32.mrf.mxu0 }
 0x23b   : > { %v1306_v8 = vmul.f32 -1.442695, %v728_v61  ;;  %v730_v7 = vadd.f32 %v729_v63, %v631_v6 }
 0x23c   : > { %v733_v10 = vpop.f32.mrf.mxu0  ;;  %v1004_v12 = vpop.f32.mrf.mxu1 }
 0x23d   : > { %1438 = vpow2.f32 %v1306_v8  ;;  %v1307_v15 = vmul.f32 -1.442695, %v730_v7  ;;  %v734_v16 = vadd.f32 %v733_v10, %v636_v62  ;;  %v1005_v17 = vadd.f32 %v1004_v12, %v631_v6  ;;  %v788_v10 = vld [vmem:[%s2003_s28] sm:$0xff] }
 0x23e   : > { %v735_v19 = vpop.f32.mrf.mxu0  ;;  %v1006_v20 = vpop.f32.mrf.mxu1 }
 0x23f   : > { %1440 = vpow2.f32 %v1307_v15  ;;  %v1308_v21 = vmul.f32 -1.442695, %v734_v16  ;;  %v1320_v22 = vmul.f32 -1.442695, %v1005_v17  ;;  %v736_v23 = vadd.f32 %v735_v19, %v636_v62  ;;  %v789_v17 = vld [vmem:[%s2003_s28 + $0x8] sm:$0xff] }
 0x240   : > { %v1007_v24 = vadd.f32 %v1006_v20, %v631_v6  ;;  %v739_v25 = vpop.f32.mrf.mxu0  ;;  %v1010_v26 = vpop.f32.mrf.mxu1 }
 0x241   : > { %1442 = vpow2.f32 %v1308_v21  ;;  %v1309_v27 = vmul.f32 -1.442695, %v736_v23  ;;  %v1011_v28 = vadd.f32 %v1010_v26, %v636_v62  ;;  %v740_v29 = vadd.f32 %v739_v25, %v641_v18  ;;  %v1326_v23 = vld [vmem:[%s2003_s28 + $0x10] sm:$0xff] }
 0x242   : > { %1444 = vpow2.f32 %v1320_v22  ;;  %v1321_v30 = vmul.f32 -1.442695, %v1007_v24  ;;  %v741_v31 = vpop.f32.mrf.mxu0  ;;  %v1012_v32 = vpop.f32.mrf.mxu1 }
 0x243   : > { %1446 = vpow2.f32 %v1309_v27  ;;  %v1322_v33 = vmul.f32 -1.442695, %v1011_v28  ;;  %v742_v34 = vadd.f32 %v741_v31, %v641_v18  ;;  %v1013_v35 = vadd.f32 %v1012_v32, %v636_v62 }
 0x244   : > { %1448 = vpow2.f32 %v1321_v30  ;;  %v745_v36 = vpop.f32.mrf.mxu0  ;;  %v1016_v37 = vpop.f32.mrf.mxu1  ;;  %v1310_v38 = vmul.f32 -1.442695, %v740_v29 }
 0x245   : > { %1450 = vpow2.f32 %v1322_v33  ;;  %v1017_v9 = vadd.f32 %v1016_v37, %v641_v18  ;;  %v1311_v40 = vmul.f32 -1.442695, %v742_v34  ;;  %v1323_v41 = vmul.f32 -1.442695, %v1013_v35  ;;  %v1327_v34 = vld [vmem:[%s2003_s28 + $0x18] sm:$0xff] }
 0x246   : > { %v747_v42 = vpop.f32.mrf.mxu0  ;;  %v1018_v43 = vpop.f32.mrf.mxu1  ;;  %v746_v44 = vadd.f32 %v745_v36, %v646_v39 }
 0x247   : > { %v1019_v45 = vadd.f32 %v1018_v43, %v641_v18  ;;  %1452 = vpow2.f32 %v1323_v41  ;;  %v1324_v13 = vmul.f32 -1.442695, %v1017_v9  ;;  %v748_v14 = vadd.f32 %v747_v42, %v646_v39 }
 0x248   : > { %1454 = vpow2.f32 %v1310_v38  ;;  %v1022_v50 = vpop.f32.mrf.mxu1 }
 0x249   : > { %1456 = vpow2.f32 %v1311_v40  ;;  %v1325_v47 = vmul.f32 -1.442695, %v1019_v45  ;;  %v1023_v1 = vadd.f32 %v1022_v50, %v646_v39 }
 0x24a   : > { %v1439_v46 = vpop.eup %1438  ;;  %1458 = vtanh.f32 %v746_v44  ;;  %v1024_v3 = vpop.f32.mrf.mxu1 }
 0x24b   : > { %v756_v48 = vadd.f32 1.0, %v1439_v46  ;;  %1460 = vpow2.f32 %v1324_v13  ;;  %v1025_v2 = vadd.f32 %v1024_v3, %v646_v39 }
 0x24c   : > { %v1441_v49 = vpop.eup %1440  ;;  %1462 = vtanh.f32 %v748_v14 }
 0x24d   : > { %v757_v51 = vadd.f32 1.0, %v1441_v49  ;;  %1464 = vpow2.f32 %v1325_v47 }
 0x24e   : > { %v1443_v52 = vpop.eup %1442  ;;  %1466 = vrcp.f32 %v756_v48 }
 0x24f   : > { %v1445_v53 = vpop.eup %1444  ;;  %v768_v54 = vadd.f32 1.0, %v1443_v52  ;;  %1468 = vrcp.f32 %v757_v51 }
 0x250   : > { %v1447_v55 = vpop.eup %1446  ;;  %v1033_v56 = vadd.f32 1.0, %v1445_v53 }
 0x251   : > { %v1449_v4 = vpop.eup %1448  ;;  %1470 = vrcp.f32 %v768_v54  ;;  %v769_v57 = vadd.f32 1.0, %v1447_v55 }
 0x252   : > { %v1451_v5 = vpop.eup %1450  ;;  %1472 = vrcp.f32 %v1033_v56  ;;  %v1034_v58 = vadd.f32 1.0, %v1449_v4 }
 0x253   : > { %1474 = vrcp.f32 %v769_v57  ;;  %v1045_v59 = vadd.f32 1.0, %v1451_v5 }
 0x254   : > { %1476 = vtanh.f32 %v1023_v1  ;;  %v1453_v0 = vpop.eup %1452 }
 0x255   : > { %1478 = vrcp.f32 %v1045_v59  ;;  %v1455_v11 = vpop.eup %1454  ;;  %v1046_v6 = vadd.f32 1.0, %v1453_v0 }
 0x256   : > { %1480 = vrcp.f32 %v1034_v58  ;;  %v1457_v60 = vpop.eup %1456  ;;  %v780_v16 = vadd.f32 1.0, %v1455_v11 }
 0x257   : > { %1482 = vtanh.f32 %v1025_v2  ;;  %v1459_v61 = vpop.eup %1458  ;;  %v781_v22 = vadd.f32 1.0, %v1457_v60 }
 0x258   : > { %1484 = vrcp.f32 %v1046_v6  ;;  %v1461_v62 = vpop.eup %1460 }
 0x259   : > { %v1463_v63 = vpop.eup %1462  ;;  %1486 = vrcp.f32 %v780_v16  ;;  %v1057_v29 = vadd.f32 1.0, %v1461_v62 }
 0x25a   : > { %v1465_v8 = vpop.eup %1464 }
 0x25b   : > { %v1467_v7 = vpop.eup %1466  ;;  %v1058_v37 = vadd.f32 1.0, %v1465_v8 }
 0x25c   : > { %v1469_v12 = vpop.eup %1468  ;;  %v792_v20 = vmul.f32 %v1467_v7, %v1459_v61 }
 0x25d   : > { %v793_v27 = vmul.f32 %v1469_v12, %v1463_v63 }
 0x25e   : > { %v1471_v15 = vpop.eup %1470 }
 0x25f   : > { %v1473_v18 = vpop.eup %1472  ;;  %v790_v19 = vmul.f32 %v1471_v15, %v788_v10 }
 0x260   : > { %v1475_v21 = vpop.eup %1474 }
 0x261   : > { %v1477_v24 = vpop.eup %1476  ;;  %v794_v25 = vadd.f32 %v792_v20, %v790_v19  ;;  %v791_v26 = vmul.f32 %v1475_v21, %v789_v17 }
 0x262   : > { %v1479_v28 = vpop.eup %1478  ;;  %v1070_v33 = vmul.f32 %v1477_v24, %v1473_v18 }
 0x263   : > { %v1481_v30 = vpop.eup %1480  ;;  %1488 = vtanh.f32 %v794_v25  ;;  %800 = vst [vmem:[%s402_s2] sm:$0xff] %v794_v25  ;;  %v795_v31 = vadd.f32 %v793_v27, %v791_v26  ;;  %v1068_v32 = vmul.f32 %v1479_v28, %v1326_v23 }
 0x264   : > { %v1483_v35 = vpop.eup %1482  ;;  %1490 = vrcp.f32 %v781_v22 }
 0x265   : > { %v1485_v36 = vpop.eup %1484  ;;  %1492 = vtanh.f32 %v795_v31  ;;  %801 = vst [vmem:[%s402_s2 + $0x8] sm:$0xff] %v795_v31  ;;  %v1072_v38 = vadd.f32 %v1070_v33, %v1068_v32  ;;  %v1071_v9 = vmul.f32 %v1483_v35, %v1481_v30 }
 0x266   : > { %1494 = vrcp.f32 %v1057_v29  ;;  %v1069_v39 = vmul.f32 %v1485_v36, %v1327_v34 }
 0x267   : > { %1496 = vtanh.f32 %v1072_v38  ;;  %1328 = vst [vmem:[%s402_s2 + $0x10] sm:$0xff] %v1072_v38 }
 0x268   : > { %v1073_v40 = vadd.f32 %v1071_v9, %v1069_v39  ;;  %1498 = vrcp.f32 %v1058_v37 }
 0x26a   : > { %1500 = vtanh.f32 %v1073_v40  ;;  %1329 = vst [vmem:[%s402_s2 + $0x18] sm:$0xff] %v1073_v40 }
 0x26b   : > { %1625 = shalt.err (!%p1622_p5)
}
 0x26c   : > { %s1626_s19 = scalar_lea.hbm %s2318_s10, 512  ;;  %s1630_s23 = scalar_lea.hbm %s2407_s7, 1024 }
 0x26d   : > { %p1627_p9 = scmp.ne.s32.totalorder %s2318_s10, %s1626_s19  ;;  %p1631_p11 = scmp.lt.s32.totalorder %s2318_s10, %s2407_s7 }
 0x26e   : > { %p1632_p6 = scmp.lt.s32.totalorder %s1630_s23, %s1626_s19 }
 0x26f   : > { %p1628_p10 = pnand %p1627_p9, %p2447_p3 }
 0x270   : > { %p1633_p12 = por %p1632_p6, %p1631_p11 }
 0x271   : > { %p1629_p8 = pneg %p1628_p10 }
 0x273   : > { %p1634_p2 = pnand %p1633_p12, %p1629_p8 }
 0x275   : > { %1637 = shalt.err (!%p1634_p2)
}
 0x276   : > { %s1732_s2 = smov 256   ;;  %v1487_v41 = vpop.eup %1486  ;;  %s395_s28 = scalar_lea.vmem [#allocation10], %s1988_s11 }
 0x277   : > { %1363 = dma.vmem_to_hbm [thread:$0]  (%p2447_p3), %s2320_s18, 512, %s2318_s10, %s1090_s17, %s1732_s2, %s1732_s2, %s1727_s26   ;;  %v1489_v42 = vpop.eup %1488 }
 0x278   : > { %v1491_v43 = vpop.eup %1490  ;;  %v798_v44 = vmul.f32 %v1489_v42, %v1487_v41  ;;  %s1104_s15 = sshll.u32 %s395_s28, 4  ;;  %s2354_s17 = scalar_lea.hbm %s2406_s6, %s1349_s30  ;;  %s2356_s15 = int_to_ptr.vmem [resolvable:$true] %s1104_s15 }
 0x279   : > { %v1493_v45 = vpop.eup %1492  ;;  %s1085_s11 = scalar_lea.sflag [#allocation4], %s1985_s21  ;;  %s1638_s8 = scalar_lea.vmem %s2356_s15, 512 }
 0x27a   : > { %v1495_v13 = vpop.eup %1494  ;;  %v799_v14 = vmul.f32 %v1493_v45, %v1491_v43  ;;  %802 = vst [vmem:[%s395_s28] sm:$0xff] %v798_v44  ;;  %p1639_p7 = scmp.ne.s32.totalorder %s2356_s15, %s1638_s8  ;;  %s1733_s9 = smov [#allocation10]  }
 0x27b   : > { %v1497_v46 = vpop.eup %1496  ;;  %s1642_s22 = sshll.u32 %s1733_s9, 4  ;;  %s1643_s22 = int_to_ptr.vmem [resolvable:$false] %s1642_s22 }
 0x27c   : > { %803 = vst [vmem:[%s395_s28 + $0x8] sm:$0xff] %v799_v14  ;;  %v1076_v47 = vmul.f32 %v1497_v46, %v1495_v13  ;;  %v1499_v48 = vpop.eup %1498  ;;  %p1640_p4 = pnand %p1639_p7, %p2447_p3  ;;  %s1644_s29 = scalar_lea.vmem %s1643_s22, 1024 }
 0x27d   : > { %v1501_v49 = vpop.eup %1500  ;;  %p1645_p13 = scmp.lt.s32.totalorder %s2356_s15, %s1643_s22  ;;  %p1646_p1 = scmp.lt.s32.totalorder %s1644_s29, %s1638_s8 }
 0x27e   : > { %1330 = vst [vmem:[%s395_s28 + $0x10] sm:$0xff] %v1076_v47  ;;  %v1077_v50 = vmul.f32 %v1501_v49, %v1499_v48  ;;  %p1641_p0 = pneg %p1640_p4 }
 0x27f   : > { %p1647_p5 = por %p1646_p1, %p1645_p13 }
 0x280   : > { %1331 = vst [vmem:[%s395_s28 + $0x18] sm:$0xff] %v1077_v50 }
 0x281   : > { %p1648_p9 = pnand %p1647_p5, %p1641_p0 }
 0x283   : > { %1651 = shalt.err (!%p1648_p9)
}
 0x284   : > { %s1652_s30 = scalar_lea.hbm %s2354_s17, 512  ;;  %s1656_s19 = scalar_lea.hbm %s2406_s6, 1024 }
 0x285   : > { %p1653_p10 = scmp.ne.s32.totalorder %s2354_s17, %s1652_s30  ;;  %p1657_p6 = scmp.lt.s32.totalorder %s2354_s17, %s2406_s6 }
 0x286   : > { %p1658_p12 = scmp.lt.s32.totalorder %s1656_s19, %s1652_s30 }
 0x287   : > { %p1654_p8 = pnand %p1653_p10, %p2447_p3 }
 0x288   : > { %p1659_p2 = por %p1658_p12, %p1657_p6 }
 0x289   : > { %p1655_p11 = pneg %p1654_p8 }
 0x28b   : > { %p1660_p7 = pnand %p1659_p2, %p1655_p11 }
 0x28d   : > { %1663 = shalt.err (!%p1660_p7)
}
 0x28e   : > { %1362 = dma.vmem_to_hbm [thread:$0]  (%p2447_p3), %s2356_s15, 512, %s2354_s17, %s1085_s11, %s1732_s2, %s1732_s2, %s1727_s26  }
 0x28f PF: > { %s2448_s23 = sld [smem:[#allocation22_spill]]  ;;  %s1136_s20 = sand.u32 1, %s1702_s24  }
 0x290   : > { %s2449_s14 = sld [smem:[#allocation19_spill]]  ;;  %s1137_s28 = scalar_lea.sflag [#allocation4], %s1136_s20 }
 0x295   : > { %p2450_p4 = scmp.ne.s32.totalorder %s2448_s23, 0 }
 0x296   : > { %p2451_p0 = scmp.ge.s32.totalorder %s2449_s14, 2 }
 0x298   : > { %p1381_p13 = pnand %p2451_p0, %p2450_p4 }
 0x29a   : > { %p1382_p1 = pneg %p1381_p13 }
 0x29c   : > { %1693 = dma.done.wait (%p1382_p1), %s1137_s28, 512  }
 0x29d   : > { %1695 = vsyncadd (%p1382_p1), %s1137_s28, 4294966784  ;;  %s1146_s18 = scalar_lea.sflag [#allocation12], %s1136_s20 }
 0x29e   : > { %1697 = dma.done.wait (%p1382_p1), %s1146_s18, 512  }
 0x29f   : > { %1699 = vsyncadd (%p1382_p1), %s1146_s18, 4294966784  ;;  %s2452_s27 = sld [smem:[#allocation20_spill]]  ;;  %s2455_s24 = smov %s1706_s25 }
 0x2a0   : > { %s2453_s16 = sld [smem:[#allocation18_spill]] }
 0x2a1   : > { %s2454_s26 = sld [smem:[#allocation21_spill]] }
 0x2a5   : > { %p28_p3 = scmp.ge.s32.totalorder %s2452_s27, 4  }
 0x2a6   : > { %s2456_s25 = smov %s2453_s16 }
 0x2a7   :  { %30 = sbr.rel (!%p28_p3) target bundleno = 12 (0xc), region = 139 }
 0x2ac   :  { %1151 = vsyncpa [#allocation3], 1 }
 0x2ad   :  { %1153 = vsyncpa [#allocation3 + $0x1], 1 }
 0x2ae   :  { %1154 = vsyncpa [#allocation6], 1 }
 0x2af   :  { %1156 = vsyncpa [#allocation6 + $0x1], 1 }
 0x2b0   :  { %1157 = vsyncpa [#allocation9], 1 }
 0x2b1   :  { %1158 = vsyncpa [#allocation4], 1 }
 0x2b2   :  { %1160 = vsyncpa [#allocation4 + $0x1], 1 }
 0x2b3   :  { %1161 = vsyncpa [#allocation12], 1 }
 0x2b4   :  { %1163 = vsyncpa [#allocation12 + $0x1], 1 }

</bundles_post_ra>
